<compile_context>
chip_gen: v7x
topology: tpu7x:2x2x1
jax: 0.10.0
libtpu: 0.0.40
codegen_flags: <defaults>
</compile_context>

<pallas_src>
import functools

import jax
import jax.numpy as jnp
from jax.experimental import pallas as pl
from jax.experimental.pallas import tpu as pltpu


def _conv3x3_lane_dense(x, w_taps, b_col, masks, H, W):
    """3x3 stride-1 replicate-padded conv in (C, HW) layout.

    x      : (Ci, HW)             activation, HW flattened row-major (h*W + w)
    w_taps : (9, Co, Ci)          tap-major (ky*3 + kx), each tap transposed
    b_col  : (Co, 1)              bias, broadcasts along lanes
    masks  : (row_top, row_bot, col_left, col_right), each (1, HW) bool
    returns: (Co, HW) float32
    """
    row_top, row_bot, col_left, col_right = masks
    Co = w_taps.shape[1]
    HW = x.shape[-1]

    acc = jnp.broadcast_to(b_col.astype(jnp.float32), (Co, HW))

    # Row shifts (replicate-clamped): x_dy[l] = x[clamp(h+dy), w]
    x_up = jnp.where(row_top, x, pltpu.roll(x, shift=W, axis=1))        # dy=-1
    x_down = jnp.where(row_bot, x, pltpu.roll(x, shift=HW - W, axis=1))  # dy=+1

    for dy, x_dy in ((-1, x_up), (0, x), (1, x_down)):
        # Column shifts (replicate-clamped): x_s[l] = x_dy[h, clamp(w+dx)]
        x_l = jnp.where(col_left, x_dy, pltpu.roll(x_dy, shift=1, axis=1))        # dx=-1
        x_r = jnp.where(col_right, x_dy, pltpu.roll(x_dy, shift=HW - 1, axis=1))  # dx=+1
        for dx, x_s in ((-1, x_l), (0, x_dy), (1, x_r)):
            tap = (dy + 1) * 3 + (dx + 1)
            acc = acc + jax.lax.dot_general(
                w_taps[tap], x_s,                       # (Co,Ci) @ (Ci,HW)
                dimension_numbers=(((1,), (0,)), ((), ())),
                preferred_element_type=jnp.float32)
    return acc


def _output_block_kernel(x_ref, w1_ref, b1_ref, w2_ref, b2_ref, o_ref, *, H, W):
    # x_ref : (Cin, HW)     one image, channels in sublanes, HW lane-dense
    # w1_ref: (9, NH, Cin)  tap-major, per-tap (Co, Ci)
    # b1_ref: (NH, 1)
    # w2_ref: (9, Cout, NH)
    # b2_ref: (Cout, 1)
    # o_ref : (Cout, HW)    lane-dense output block (unmasked full-width store)
    HW = H * W

    # Edge masks, built once and shared by both convs.
    lane = jax.lax.broadcasted_iota(jnp.int32, (1, HW), 1)
    col = lane % W
    masks = (lane < W,                 # row_top    (h == 0)
             lane >= HW - W,           # row_bot    (h == H-1)
             col == 0,                 # col_left   (w == 0)
             col == W - 1)             # col_right  (w == W-1)

    x = x_ref[...]                                            # (Cin, HW)
    w1 = w1_ref[...]                                          # (9, NH, Cin)
    w2 = w2_ref[...]                                          # (9, Cout, NH)

    h = _conv3x3_lane_dense(x, w1, b1_ref[...], masks, H, W)   # (NH, HW) f32
    y = _conv3x3_lane_dense(h, w2, b2_ref[...], masks, H, W)   # (Cout, HW) f32

    o_ref[...] = y.astype(o_ref.dtype)


def output_block_pallas(x_nchw, params):
    """Fused Output_Block forward. x_nchw: (N, Cin, H, W) -> (N, Cout, H, W)."""
    N, Cin, H, W = x_nchw.shape
    w1, b1 = params["w1"], params["b1"]          # (3,3,Cin,NH), (NH,)
    w2, b2 = params["w2"], params["b2"]          # (3,3,NH,Cout), (Cout,)
    NH = w1.shape[-1]
    Cout = w2.shape[-1]
    HW = H * W

    # Free (contiguous) activation reshape; tiny weight repacks (tap-major,
    # each tap transposed to (Co, Ci) for the Co-major matmul orientation).
    x2 = x_nchw.reshape(N, Cin, HW)
    w1_t = jnp.transpose(w1, (0, 1, 3, 2)).reshape(9, NH, Cin)
    w2_t = jnp.transpose(w2, (0, 1, 3, 2)).reshape(9, Cout, NH)
    b1_c = b1.reshape(NH, 1)
    b2_c = b2.reshape(Cout, 1)

    kern = functools.partial(_output_block_kernel, H=H, W=W)
    out = pl.pallas_call(
        kern,
        out_shape=jax.ShapeDtypeStruct((N, Cout, HW), x_nchw.dtype),
        grid=(N,),
        in_specs=[
            pl.BlockSpec((pl.Squeezed(), Cin, HW), lambda n: (n, 0, 0)),
            pl.BlockSpec((9, NH, Cin), lambda n: (0, 0, 0)),
            pl.BlockSpec((NH, 1), lambda n: (0, 0)),
            pl.BlockSpec((9, Cout, NH), lambda n: (0, 0, 0)),
            pl.BlockSpec((Cout, 1), lambda n: (0, 0)),
        ],
        out_specs=pl.BlockSpec((pl.Squeezed(), Cout, HW), lambda n: (n, 0, 0)),
        compiler_params=pltpu.CompilerParams(
            dimension_semantics=("parallel",)),
    )(x2, w1_t, b1_c, w2_t, b2_c)

    return out.reshape(N, Cout, H, W)            # free reshape back to NCHW


def init_output_block_params(key, in_channels, out_channels, n_hidden=32,
                             dtype=jnp.float32):
    """Deterministic PyTorch-style (kaiming-uniform-ish) init, HWIO weights."""
    k1, k2, k3, k4 = jax.random.split(key, 4)
    fan1 = in_channels * 9
    fan2 = n_hidden * 9
    b1lim = 1.0 / jnp.sqrt(fan1)
    b2lim = 1.0 / jnp.sqrt(fan2)
    return {
        "w1": jax.random.uniform(k1, (3, 3, in_channels, n_hidden),
                                 dtype, -b1lim, b1lim),
        "b1": jax.random.uniform(k2, (n_hidden,), dtype, -b1lim, b1lim),
        "w2": jax.random.uniform(k3, (3, 3, n_hidden, out_channels),
                                 dtype, -b2lim, b2lim),
        "b2": jax.random.uniform(k4, (out_channels,), dtype, -b2lim, b2lim),
    }


@jax.jit
def output_block(x_nchw, params):
    return output_block_pallas(x_nchw, params)


def _reference(x_nchw, params):
    """Pure-JAX reference (lax conv, replicate pad) for correctness check."""
    x = jnp.transpose(x_nchw, (0, 2, 3, 1))

    def conv(x, w, b):
        xp = jnp.pad(x, ((0, 0), (1, 1), (1, 1), (0, 0)), mode="edge")
        y = jax.lax.conv_general_dilated(
            xp, w, window_strides=(1, 1), padding="VALID",
            dimension_numbers=("NHWC", "HWIO", "NHWC"))
        return y + b[None, None, None, :]

    h = conv(x, params["w1"], params["b1"])
    y = conv(h, params["w2"], params["b2"])
    return jnp.transpose(y, (0, 3, 1, 2))


if __name__ == "__main__":
    N, Cin, Cout, H, W, NH = 2, 4, 4, 16, 16, 32

    key = jax.random.PRNGKey(0)
    kx, kp = jax.random.split(key)
    x = jax.random.normal(kx, (N, Cin, H, W), jnp.float32)
    params = init_output_block_params(kp, Cin, Cout, n_hidden=NH)

    out = output_block(x, params)
    out = jax.block_until_ready(out)

    ref = _reference(x, params)
    assert out.shape == (N, Cout, H, W), out.shape
    assert jnp.allclose(out, ref, atol=1e-4, rtol=1e-4), \
        float(jnp.max(jnp.abs(out - ref)))

    print("KERNEL_OK")
</pallas_src>

<mosaic_0001>
module attributes {stable_mosaic.version = 11 : i64} {
  func.func @_output_block_kernel(%arg0: i32, %arg1: memref<1x4x256xf32, #tpu.memory_space<vmem>>, %arg2: memref<9x32x4xf32, #tpu.memory_space<vmem>>, %arg3: memref<32x1xf32, #tpu.memory_space<vmem>>, %arg4: memref<9x4x32xf32, #tpu.memory_space<vmem>>, %arg5: memref<4x1xf32, #tpu.memory_space<vmem>>, %arg6: memref<1x4x256xf32, #tpu.memory_space<vmem>>) attributes {dimension_semantics = [#tpu.dimension_semantics<parallel>], iteration_bounds = array<i64: 2>, scalar_prefetch = 0 : i64, scratch_operands = 0 : i64, tpu.core_type = #tpu.core_type<tc>, window_params = [{transform_indices = @transform_0, window_bounds = array<i64: 1, 4, 256>}, {pipeline_mode = #tpu.pipeline_mode<synchronous>, transform_indices = @transform_1, window_bounds = array<i64: 9, 32, 4>}, {pipeline_mode = #tpu.pipeline_mode<synchronous>, transform_indices = @transform_2, window_bounds = array<i64: 32, 1>}, {pipeline_mode = #tpu.pipeline_mode<synchronous>, transform_indices = @transform_3, window_bounds = array<i64: 9, 4, 32>}, {pipeline_mode = #tpu.pipeline_mode<synchronous>, transform_indices = @transform_4, window_bounds = array<i64: 4, 1>}, {transform_indices = @transform_5, window_bounds = array<i64: 1, 4, 256>}]} {
    %0 = tpu.iota {dimensions = array<i32: 1>} : vector<1x256xi32>
    %c16_i32 = arith.constant 16 : i32
    %c0_i32 = arith.constant 0 : i32
    %1 = arith.cmpi eq, %c16_i32, %c0_i32 : i32
    %c1_i32 = arith.constant 1 : i32
    %2 = arith.select %1, %c1_i32, %c16_i32 : i32
    %3 = vector.broadcast %2 : i32 to vector<1x256xi32>
    %4 = arith.remsi %0, %3 : vector<1x256xi32>
    %c0_i32_0 = arith.constant 0 : i32
    %5 = vector.broadcast %c0_i32_0 : i32 to vector<1x256xi32>
    %6 = arith.cmpi ne, %4, %5 : vector<1x256xi32>
    %c0_i32_1 = arith.constant 0 : i32
    %7 = vector.broadcast %c0_i32_1 : i32 to vector<1x256xi32>
    %8 = arith.cmpi slt, %4, %7 : vector<1x256xi32>
    %c0_i32_2 = arith.constant 0 : i32
    %9 = arith.cmpi slt, %2, %c0_i32_2 : i32
    %10 = vector.broadcast %9 : i1 to vector<1x256xi1>
    %11 = vector.broadcast %10 : vector<1x256xi1> to vector<1x256xi1>
    %12 = arith.xori %8, %11 : vector<1x256xi1>
    %13 = arith.andi %12, %6 : vector<1x256xi1>
    %14 = vector.broadcast %2 : i32 to vector<1x256xi32>
    %15 = arith.addi %4, %14 : vector<1x256xi32>
    %16 = arith.select %13, %15, %4 : vector<1x256xi1>, vector<1x256xi32>
    %c16_i32_3 = arith.constant 16 : i32
    %17 = vector.broadcast %c16_i32_3 : i32 to vector<1x256xi32>
    %18 = arith.cmpi slt, %0, %17 : vector<1x256xi32>
    %c240_i32 = arith.constant 240 : i32
    %19 = vector.broadcast %c240_i32 : i32 to vector<1x256xi32>
    %20 = arith.cmpi sge, %0, %19 : vector<1x256xi32>
    %c0_i32_4 = arith.constant 0 : i32
    %21 = vector.broadcast %c0_i32_4 : i32 to vector<1x256xi32>
    %22 = arith.cmpi eq, %16, %21 : vector<1x256xi32>
    %c15_i32 = arith.constant 15 : i32
    %23 = vector.broadcast %c15_i32 : i32 to vector<1x256xi32>
    %24 = arith.cmpi eq, %16, %23 : vector<1x256xi32>
    %c0 = arith.constant 0 : index
    %c0_5 = arith.constant 0 : index
    %c0_6 = arith.constant 0 : index
    %25 = vector.load %arg1[%c0, %c0_5, %c0_6] : memref<1x4x256xf32, #tpu.memory_space<vmem>>, vector<1x4x256xf32>
    %26 = vector.shape_cast %25 : vector<1x4x256xf32> to vector<4x256xf32>
    %c0_7 = arith.constant 0 : index
    %c0_8 = arith.constant 0 : index
    %c0_9 = arith.constant 0 : index
    %27 = vector.load %arg2[%c0_7, %c0_8, %c0_9] : memref<9x32x4xf32, #tpu.memory_space<vmem>>, vector<9x32x4xf32>
    %c0_10 = arith.constant 0 : index
    %c0_11 = arith.constant 0 : index
    %c0_12 = arith.constant 0 : index
    %28 = vector.load %arg4[%c0_10, %c0_11, %c0_12] : memref<9x4x32xf32, #tpu.memory_space<vmem>>, vector<9x4x32xf32>
    %c0_13 = arith.constant 0 : index
    %c0_14 = arith.constant 0 : index
    %29 = vector.load %arg3[%c0_13, %c0_14] : memref<32x1xf32, #tpu.memory_space<vmem>>, vector<32x1xf32>
    %30 = vector.shape_cast %29 : vector<32x1xf32> to vector<32x1xf32>
    %31 = vector.broadcast %30 : vector<32x1xf32> to vector<32x256xf32>
    %c16_i32_15 = arith.constant 16 : i32
    %32 = tpu.dynamic_rotate %26 by %c16_i32_15 dim 1 : vector<4x256xf32>, i32 -> vector<4x256xf32>
    %33 = vector.shape_cast %18 : vector<1x256xi1> to vector<1x256xi1>
    %34 = vector.broadcast %33 : vector<1x256xi1> to vector<4x256xi1>
    %35 = arith.select %34, %26, %32 : vector<4x256xi1>, vector<4x256xf32>
    %c240_i32_16 = arith.constant 240 : i32
    %36 = tpu.dynamic_rotate %26 by %c240_i32_16 dim 1 : vector<4x256xf32>, i32 -> vector<4x256xf32>
    %37 = vector.shape_cast %20 : vector<1x256xi1> to vector<1x256xi1>
    %38 = vector.broadcast %37 : vector<1x256xi1> to vector<4x256xi1>
    %39 = arith.select %38, %26, %36 : vector<4x256xi1>, vector<4x256xf32>
    %c1_i32_17 = arith.constant 1 : i32
    %40 = tpu.dynamic_rotate %35 by %c1_i32_17 dim 1 : vector<4x256xf32>, i32 -> vector<4x256xf32>
    %41 = vector.shape_cast %22 : vector<1x256xi1> to vector<1x256xi1>
    %42 = vector.broadcast %41 : vector<1x256xi1> to vector<4x256xi1>
    %43 = arith.select %42, %35, %40 : vector<4x256xi1>, vector<4x256xf32>
    %c255_i32 = arith.constant 255 : i32
    %44 = tpu.dynamic_rotate %35 by %c255_i32 dim 1 : vector<4x256xf32>, i32 -> vector<4x256xf32>
    %45 = vector.shape_cast %24 : vector<1x256xi1> to vector<1x256xi1>
    %46 = vector.broadcast %45 : vector<1x256xi1> to vector<4x256xi1>
    %47 = arith.select %46, %35, %44 : vector<4x256xi1>, vector<4x256xf32>
    %48 = vector.extract_strided_slice %27 {offsets = [0, 0, 0], sizes = [1, 32, 4], strides = [1, 1, 1]} : vector<9x32x4xf32> to vector<1x32x4xf32>
    %49 = vector.shape_cast %48 : vector<1x32x4xf32> to vector<32x4xf32>
    %cst = arith.constant dense<0.000000e+00> : vector<32x256xf32>
    %50 = tpu.matmul %49, %43, %cst {dimension_numbers = #tpu.dot_dimension_numbers<[1], [0], [0], [1], [0, 0, 1, 1], [], []>} : vector<32x4xf32>, vector<4x256xf32>, vector<32x256xf32> -> vector<32x256xf32>
    %51 = arith.addf %31, %50 : vector<32x256xf32>
    %52 = vector.extract_strided_slice %27 {offsets = [1, 0, 0], sizes = [1, 32, 4], strides = [1, 1, 1]} : vector<9x32x4xf32> to vector<1x32x4xf32>
    %53 = vector.shape_cast %52 : vector<1x32x4xf32> to vector<32x4xf32>
    %cst_18 = arith.constant dense<0.000000e+00> : vector<32x256xf32>
    %54 = tpu.matmul %53, %35, %cst_18 {dimension_numbers = #tpu.dot_dimension_numbers<[1], [0], [0], [1], [0, 0, 1, 1], [], []>} : vector<32x4xf32>, vector<4x256xf32>, vector<32x256xf32> -> vector<32x256xf32>
    %55 = arith.addf %51, %54 : vector<32x256xf32>
    %56 = vector.extract_strided_slice %27 {offsets = [2, 0, 0], sizes = [1, 32, 4], strides = [1, 1, 1]} : vector<9x32x4xf32> to vector<1x32x4xf32>
    %57 = vector.shape_cast %56 : vector<1x32x4xf32> to vector<32x4xf32>
    %cst_19 = arith.constant dense<0.000000e+00> : vector<32x256xf32>
    %58 = tpu.matmul %57, %47, %cst_19 {dimension_numbers = #tpu.dot_dimension_numbers<[1], [0], [0], [1], [0, 0, 1, 1], [], []>} : vector<32x4xf32>, vector<4x256xf32>, vector<32x256xf32> -> vector<32x256xf32>
    %59 = arith.addf %55, %58 : vector<32x256xf32>
    %c1_i32_20 = arith.constant 1 : i32
    %60 = tpu.dynamic_rotate %26 by %c1_i32_20 dim 1 : vector<4x256xf32>, i32 -> vector<4x256xf32>
    %61 = vector.shape_cast %22 : vector<1x256xi1> to vector<1x256xi1>
    %62 = vector.broadcast %61 : vector<1x256xi1> to vector<4x256xi1>
    %63 = arith.select %62, %26, %60 : vector<4x256xi1>, vector<4x256xf32>
    %c255_i32_21 = arith.constant 255 : i32
    %64 = tpu.dynamic_rotate %26 by %c255_i32_21 dim 1 : vector<4x256xf32>, i32 -> vector<4x256xf32>
    %65 = vector.shape_cast %24 : vector<1x256xi1> to vector<1x256xi1>
    %66 = vector.broadcast %65 : vector<1x256xi1> to vector<4x256xi1>
    %67 = arith.select %66, %26, %64 : vector<4x256xi1>, vector<4x256xf32>
    %68 = vector.extract_strided_slice %27 {offsets = [3, 0, 0], sizes = [1, 32, 4], strides = [1, 1, 1]} : vector<9x32x4xf32> to vector<1x32x4xf32>
    %69 = vector.shape_cast %68 : vector<1x32x4xf32> to vector<32x4xf32>
    %cst_22 = arith.constant dense<0.000000e+00> : vector<32x256xf32>
    %70 = tpu.matmul %69, %63, %cst_22 {dimension_numbers = #tpu.dot_dimension_numbers<[1], [0], [0], [1], [0, 0, 1, 1], [], []>} : vector<32x4xf32>, vector<4x256xf32>, vector<32x256xf32> -> vector<32x256xf32>
    %71 = arith.addf %59, %70 : vector<32x256xf32>
    %72 = vector.extract_strided_slice %27 {offsets = [4, 0, 0], sizes = [1, 32, 4], strides = [1, 1, 1]} : vector<9x32x4xf32> to vector<1x32x4xf32>
    %73 = vector.shape_cast %72 : vector<1x32x4xf32> to vector<32x4xf32>
    %cst_23 = arith.constant dense<0.000000e+00> : vector<32x256xf32>
    %74 = tpu.matmul %73, %26, %cst_23 {dimension_numbers = #tpu.dot_dimension_numbers<[1], [0], [0], [1], [0, 0, 1, 1], [], []>} : vector<32x4xf32>, vector<4x256xf32>, vector<32x256xf32> -> vector<32x256xf32>
    %75 = arith.addf %71, %74 : vector<32x256xf32>
    %76 = vector.extract_strided_slice %27 {offsets = [5, 0, 0], sizes = [1, 32, 4], strides = [1, 1, 1]} : vector<9x32x4xf32> to vector<1x32x4xf32>
    %77 = vector.shape_cast %76 : vector<1x32x4xf32> to vector<32x4xf32>
    %cst_24 = arith.constant dense<0.000000e+00> : vector<32x256xf32>
    %78 = tpu.matmul %77, %67, %cst_24 {dimension_numbers = #tpu.dot_dimension_numbers<[1], [0], [0], [1], [0, 0, 1, 1], [], []>} : vector<32x4xf32>, vector<4x256xf32>, vector<32x256xf32> -> vector<32x256xf32>
    %79 = arith.addf %75, %78 : vector<32x256xf32>
    %c1_i32_25 = arith.constant 1 : i32
    %80 = tpu.dynamic_rotate %39 by %c1_i32_25 dim 1 : vector<4x256xf32>, i32 -> vector<4x256xf32>
    %81 = vector.shape_cast %22 : vector<1x256xi1> to vector<1x256xi1>
    %82 = vector.broadcast %81 : vector<1x256xi1> to vector<4x256xi1>
    %83 = arith.select %82, %39, %80 : vector<4x256xi1>, vector<4x256xf32>
    %c255_i32_26 = arith.constant 255 : i32
    %84 = tpu.dynamic_rotate %39 by %c255_i32_26 dim 1 : vector<4x256xf32>, i32 -> vector<4x256xf32>
    %85 = vector.shape_cast %24 : vector<1x256xi1> to vector<1x256xi1>
    %86 = vector.broadcast %85 : vector<1x256xi1> to vector<4x256xi1>
    %87 = arith.select %86, %39, %84 : vector<4x256xi1>, vector<4x256xf32>
    %88 = vector.extract_strided_slice %27 {offsets = [6, 0, 0], sizes = [1, 32, 4], strides = [1, 1, 1]} : vector<9x32x4xf32> to vector<1x32x4xf32>
    %89 = vector.shape_cast %88 : vector<1x32x4xf32> to vector<32x4xf32>
    %cst_27 = arith.constant dense<0.000000e+00> : vector<32x256xf32>
    %90 = tpu.matmul %89, %83, %cst_27 {dimension_numbers = #tpu.dot_dimension_numbers<[1], [0], [0], [1], [0, 0, 1, 1], [], []>} : vector<32x4xf32>, vector<4x256xf32>, vector<32x256xf32> -> vector<32x256xf32>
    %91 = arith.addf %79, %90 : vector<32x256xf32>
    %92 = vector.extract_strided_slice %27 {offsets = [7, 0, 0], sizes = [1, 32, 4], strides = [1, 1, 1]} : vector<9x32x4xf32> to vector<1x32x4xf32>
    %93 = vector.shape_cast %92 : vector<1x32x4xf32> to vector<32x4xf32>
    %cst_28 = arith.constant dense<0.000000e+00> : vector<32x256xf32>
    %94 = tpu.matmul %93, %39, %cst_28 {dimension_numbers = #tpu.dot_dimension_numbers<[1], [0], [0], [1], [0, 0, 1, 1], [], []>} : vector<32x4xf32>, vector<4x256xf32>, vector<32x256xf32> -> vector<32x256xf32>
    %95 = arith.addf %91, %94 : vector<32x256xf32>
    %96 = vector.extract_strided_slice %27 {offsets = [8, 0, 0], sizes = [1, 32, 4], strides = [1, 1, 1]} : vector<9x32x4xf32> to vector<1x32x4xf32>
    %97 = vector.shape_cast %96 : vector<1x32x4xf32> to vector<32x4xf32>
    %cst_29 = arith.constant dense<0.000000e+00> : vector<32x256xf32>
    %98 = tpu.matmul %97, %87, %cst_29 {dimension_numbers = #tpu.dot_dimension_numbers<[1], [0], [0], [1], [0, 0, 1, 1], [], []>} : vector<32x4xf32>, vector<4x256xf32>, vector<32x256xf32> -> vector<32x256xf32>
    %99 = arith.addf %95, %98 : vector<32x256xf32>
    %c0_30 = arith.constant 0 : index
    %c0_31 = arith.constant 0 : index
    %100 = vector.load %arg5[%c0_30, %c0_31] : memref<4x1xf32, #tpu.memory_space<vmem>>, vector<4x1xf32>
    %101 = vector.shape_cast %100 : vector<4x1xf32> to vector<4x1xf32>
    %102 = vector.broadcast %101 : vector<4x1xf32> to vector<4x256xf32>
    %c16_i32_32 = arith.constant 16 : i32
    %103 = tpu.dynamic_rotate %99 by %c16_i32_32 dim 1 : vector<32x256xf32>, i32 -> vector<32x256xf32>
    %104 = vector.shape_cast %18 : vector<1x256xi1> to vector<1x256xi1>
    %105 = vector.broadcast %104 : vector<1x256xi1> to vector<32x256xi1>
    %106 = arith.select %105, %99, %103 : vector<32x256xi1>, vector<32x256xf32>
    %c240_i32_33 = arith.constant 240 : i32
    %107 = tpu.dynamic_rotate %99 by %c240_i32_33 dim 1 : vector<32x256xf32>, i32 -> vector<32x256xf32>
    %108 = vector.shape_cast %20 : vector<1x256xi1> to vector<1x256xi1>
    %109 = vector.broadcast %108 : vector<1x256xi1> to vector<32x256xi1>
    %110 = arith.select %109, %99, %107 : vector<32x256xi1>, vector<32x256xf32>
    %c1_i32_34 = arith.constant 1 : i32
    %111 = tpu.dynamic_rotate %106 by %c1_i32_34 dim 1 : vector<32x256xf32>, i32 -> vector<32x256xf32>
    %112 = vector.shape_cast %22 : vector<1x256xi1> to vector<1x256xi1>
    %113 = vector.broadcast %112 : vector<1x256xi1> to vector<32x256xi1>
    %114 = arith.select %113, %106, %111 : vector<32x256xi1>, vector<32x256xf32>
    %c255_i32_35 = arith.constant 255 : i32
    %115 = tpu.dynamic_rotate %106 by %c255_i32_35 dim 1 : vector<32x256xf32>, i32 -> vector<32x256xf32>
    %116 = vector.shape_cast %24 : vector<1x256xi1> to vector<1x256xi1>
    %117 = vector.broadcast %116 : vector<1x256xi1> to vector<32x256xi1>
    %118 = arith.select %117, %106, %115 : vector<32x256xi1>, vector<32x256xf32>
    %119 = vector.extract_strided_slice %28 {offsets = [0, 0, 0], sizes = [1, 4, 32], strides = [1, 1, 1]} : vector<9x4x32xf32> to vector<1x4x32xf32>
    %120 = vector.shape_cast %119 : vector<1x4x32xf32> to vector<4x32xf32>
    %cst_36 = arith.constant dense<0.000000e+00> : vector<4x256xf32>
    %121 = tpu.matmul %120, %114, %cst_36 {dimension_numbers = #tpu.dot_dimension_numbers<[1], [0], [0], [1], [0, 0, 1, 1], [], []>} : vector<4x32xf32>, vector<32x256xf32>, vector<4x256xf32> -> vector<4x256xf32>
    %122 = arith.addf %102, %121 : vector<4x256xf32>
    %123 = vector.extract_strided_slice %28 {offsets = [1, 0, 0], sizes = [1, 4, 32], strides = [1, 1, 1]} : vector<9x4x32xf32> to vector<1x4x32xf32>
    %124 = vector.shape_cast %123 : vector<1x4x32xf32> to vector<4x32xf32>
    %cst_37 = arith.constant dense<0.000000e+00> : vector<4x256xf32>
    %125 = tpu.matmul %124, %106, %cst_37 {dimension_numbers = #tpu.dot_dimension_numbers<[1], [0], [0], [1], [0, 0, 1, 1], [], []>} : vector<4x32xf32>, vector<32x256xf32>, vector<4x256xf32> -> vector<4x256xf32>
    %126 = arith.addf %122, %125 : vector<4x256xf32>
    %127 = vector.extract_strided_slice %28 {offsets = [2, 0, 0], sizes = [1, 4, 32], strides = [1, 1, 1]} : vector<9x4x32xf32> to vector<1x4x32xf32>
    %128 = vector.shape_cast %127 : vector<1x4x32xf32> to vector<4x32xf32>
    %cst_38 = arith.constant dense<0.000000e+00> : vector<4x256xf32>
    %129 = tpu.matmul %128, %118, %cst_38 {dimension_numbers = #tpu.dot_dimension_numbers<[1], [0], [0], [1], [0, 0, 1, 1], [], []>} : vector<4x32xf32>, vector<32x256xf32>, vector<4x256xf32> -> vector<4x256xf32>
    %130 = arith.addf %126, %129 : vector<4x256xf32>
    %c1_i32_39 = arith.constant 1 : i32
    %131 = tpu.dynamic_rotate %99 by %c1_i32_39 dim 1 : vector<32x256xf32>, i32 -> vector<32x256xf32>
    %132 = vector.shape_cast %22 : vector<1x256xi1> to vector<1x256xi1>
    %133 = vector.broadcast %132 : vector<1x256xi1> to vector<32x256xi1>
    %134 = arith.select %133, %99, %131 : vector<32x256xi1>, vector<32x256xf32>
    %c255_i32_40 = arith.constant 255 : i32
    %135 = tpu.dynamic_rotate %99 by %c255_i32_40 dim 1 : vector<32x256xf32>, i32 -> vector<32x256xf32>
    %136 = vector.shape_cast %24 : vector<1x256xi1> to vector<1x256xi1>
    %137 = vector.broadcast %136 : vector<1x256xi1> to vector<32x256xi1>
    %138 = arith.select %137, %99, %135 : vector<32x256xi1>, vector<32x256xf32>
    %139 = vector.extract_strided_slice %28 {offsets = [3, 0, 0], sizes = [1, 4, 32], strides = [1, 1, 1]} : vector<9x4x32xf32> to vector<1x4x32xf32>
    %140 = vector.shape_cast %139 : vector<1x4x32xf32> to vector<4x32xf32>
    %cst_41 = arith.constant dense<0.000000e+00> : vector<4x256xf32>
    %141 = tpu.matmul %140, %134, %cst_41 {dimension_numbers = #tpu.dot_dimension_numbers<[1], [0], [0], [1], [0, 0, 1, 1], [], []>} : vector<4x32xf32>, vector<32x256xf32>, vector<4x256xf32> -> vector<4x256xf32>
    %142 = arith.addf %130, %141 : vector<4x256xf32>
    %143 = vector.extract_strided_slice %28 {offsets = [4, 0, 0], sizes = [1, 4, 32], strides = [1, 1, 1]} : vector<9x4x32xf32> to vector<1x4x32xf32>
    %144 = vector.shape_cast %143 : vector<1x4x32xf32> to vector<4x32xf32>
    %cst_42 = arith.constant dense<0.000000e+00> : vector<4x256xf32>
    %145 = tpu.matmul %144, %99, %cst_42 {dimension_numbers = #tpu.dot_dimension_numbers<[1], [0], [0], [1], [0, 0, 1, 1], [], []>} : vector<4x32xf32>, vector<32x256xf32>, vector<4x256xf32> -> vector<4x256xf32>
    %146 = arith.addf %142, %145 : vector<4x256xf32>
    %147 = vector.extract_strided_slice %28 {offsets = [5, 0, 0], sizes = [1, 4, 32], strides = [1, 1, 1]} : vector<9x4x32xf32> to vector<1x4x32xf32>
    %148 = vector.shape_cast %147 : vector<1x4x32xf32> to vector<4x32xf32>
    %cst_43 = arith.constant dense<0.000000e+00> : vector<4x256xf32>
    %149 = tpu.matmul %148, %138, %cst_43 {dimension_numbers = #tpu.dot_dimension_numbers<[1], [0], [0], [1], [0, 0, 1, 1], [], []>} : vector<4x32xf32>, vector<32x256xf32>, vector<4x256xf32> -> vector<4x256xf32>
    %150 = arith.addf %146, %149 : vector<4x256xf32>
    %c1_i32_44 = arith.constant 1 : i32
    %151 = tpu.dynamic_rotate %110 by %c1_i32_44 dim 1 : vector<32x256xf32>, i32 -> vector<32x256xf32>
    %152 = vector.shape_cast %22 : vector<1x256xi1> to vector<1x256xi1>
    %153 = vector.broadcast %152 : vector<1x256xi1> to vector<32x256xi1>
    %154 = arith.select %153, %110, %151 : vector<32x256xi1>, vector<32x256xf32>
    %c255_i32_45 = arith.constant 255 : i32
    %155 = tpu.dynamic_rotate %110 by %c255_i32_45 dim 1 : vector<32x256xf32>, i32 -> vector<32x256xf32>
    %156 = vector.shape_cast %24 : vector<1x256xi1> to vector<1x256xi1>
    %157 = vector.broadcast %156 : vector<1x256xi1> to vector<32x256xi1>
    %158 = arith.select %157, %110, %155 : vector<32x256xi1>, vector<32x256xf32>
    %159 = vector.extract_strided_slice %28 {offsets = [6, 0, 0], sizes = [1, 4, 32], strides = [1, 1, 1]} : vector<9x4x32xf32> to vector<1x4x32xf32>
    %160 = vector.shape_cast %159 : vector<1x4x32xf32> to vector<4x32xf32>
    %cst_46 = arith.constant dense<0.000000e+00> : vector<4x256xf32>
    %161 = tpu.matmul %160, %154, %cst_46 {dimension_numbers = #tpu.dot_dimension_numbers<[1], [0], [0], [1], [0, 0, 1, 1], [], []>} : vector<4x32xf32>, vector<32x256xf32>, vector<4x256xf32> -> vector<4x256xf32>
    %162 = arith.addf %150, %161 : vector<4x256xf32>
    %163 = vector.extract_strided_slice %28 {offsets = [7, 0, 0], sizes = [1, 4, 32], strides = [1, 1, 1]} : vector<9x4x32xf32> to vector<1x4x32xf32>
    %164 = vector.shape_cast %163 : vector<1x4x32xf32> to vector<4x32xf32>
    %cst_47 = arith.constant dense<0.000000e+00> : vector<4x256xf32>
    %165 = tpu.matmul %164, %110, %cst_47 {dimension_numbers = #tpu.dot_dimension_numbers<[1], [0], [0], [1], [0, 0, 1, 1], [], []>} : vector<4x32xf32>, vector<32x256xf32>, vector<4x256xf32> -> vector<4x256xf32>
    %166 = arith.addf %162, %165 : vector<4x256xf32>
    %167 = vector.extract_strided_slice %28 {offsets = [8, 0, 0], sizes = [1, 4, 32], strides = [1, 1, 1]} : vector<9x4x32xf32> to vector<1x4x32xf32>
    %168 = vector.shape_cast %167 : vector<1x4x32xf32> to vector<4x32xf32>
    %cst_48 = arith.constant dense<0.000000e+00> : vector<4x256xf32>
    %169 = tpu.matmul %168, %158, %cst_48 {dimension_numbers = #tpu.dot_dimension_numbers<[1], [0], [0], [1], [0, 0, 1, 1], [], []>} : vector<4x32xf32>, vector<32x256xf32>, vector<4x256xf32> -> vector<4x256xf32>
    %170 = arith.addf %166, %169 : vector<4x256xf32>
    %c0_49 = arith.constant 0 : index
    %c0_50 = arith.constant 0 : index
    %c0_51 = arith.constant 0 : index
    %171 = vector.load %arg6[%c0_49, %c0_50, %c0_51] : memref<1x4x256xf32, #tpu.memory_space<vmem>>, vector<1x4x256xf32>
    %172 = vector.shape_cast %171 : vector<1x4x256xf32> to vector<4x256xf32>
    %173 = vector.shape_cast %170 : vector<4x256xf32> to vector<1x4x256xf32>
    tpu.vector_store %arg6[%c0_49, %c0_50, %c0_51], %173 {strides = array<i32>} : memref<1x4x256xf32, #tpu.memory_space<vmem>>, vector<1x4x256xf32>,
    return
  }
  func.func @transform_0(%arg0: i32) -> (i32, i32, i32) {
    %c0_i32 = arith.constant 0 : i32
    %c0_i32_0 = arith.constant 0 : i32
    %c0_i32_1 = arith.constant 0 : i32
    return %arg0, %c0_i32, %c0_i32_0 : i32, i32, i32
  }
  func.func @transform_1(%arg0: i32) -> (i32, i32, i32) {
    %c0_i32 = arith.constant 0 : i32
    %c0_i32_0 = arith.constant 0 : i32
    %c0_i32_1 = arith.constant 0 : i32
    %c0_i32_2 = arith.constant 0 : i32
    return %c0_i32, %c0_i32_0, %c0_i32_1 : i32, i32, i32
  }
  func.func @transform_2(%arg0: i32) -> (i32, i32) {
    %c0_i32 = arith.constant 0 : i32
    %c0_i32_0 = arith.constant 0 : i32
    %c0_i32_1 = arith.constant 0 : i32
    return %c0_i32, %c0_i32_0 : i32, i32
  }
  func.func @transform_3(%arg0: i32) -> (i32, i32, i32) {
    %c0_i32 = arith.constant 0 : i32
    %c0_i32_0 = arith.constant 0 : i32
    %c0_i32_1 = arith.constant 0 : i32
    %c0_i32_2 = arith.constant 0 : i32
    return %c0_i32, %c0_i32_0, %c0_i32_1 : i32, i32, i32
  }
  func.func @transform_4(%arg0: i32) -> (i32, i32) {
    %c0_i32 = arith.constant 0 : i32
    %c0_i32_0 = arith.constant 0 : i32
    %c0_i32_1 = arith.constant 0 : i32
    return %c0_i32, %c0_i32_0 : i32, i32
  }
  func.func @transform_5(%arg0: i32) -> (i32, i32, i32) {
    %c0_i32 = arith.constant 0 : i32
    %c0_i32_0 = arith.constant 0 : i32
    %c0_i32_1 = arith.constant 0 : i32
    return %arg0, %c0_i32, %c0_i32_0 : i32, i32, i32
  }
}

</mosaic_0001>

<bundles_post_ra>
// kernel: output_block.1
= control target key start
LH: loop header
LB: loop body
LE: loop exit
PB: predicated region body
PF: predicated region fallthrough
CT: control target
= control target key end

     0   :  { %s2917_s18 = smov 0   ;;  %s3801_s0 = inlined_call_operand.vmem [shape: f32[2,4,256], index: 0, kind: input, shape index: {}]   ;;  %s3802_s1 = inlined_call_operand.vmem [shape: f32[9,32,4], index: 1, kind: input, shape index: {}]   ;;  %s3803_s2 = inlined_call_operand.vmem [shape: f32[32,1], index: 2, kind: input, shape index: {}]   ;;  %s3804_s3 = inlined_call_operand.vmem [shape: f32[9,4,32], index: 3, kind: input, shape index: {}]   ;;  %s3805_s4 = inlined_call_operand.vmem [shape: f32[4,1], index: 4, kind: input, shape index: {}]   ;;  %s3806_s5 = inlined_call_operand.vmem [shape: f32[2,4,256], index: 5, kind: output, shape index: {}]  }
   0x1 LB: > { %s2458_s19 = sadd.s32 4294967295, %s2879_s18   ;;  %p2462_p0 = scmp.ge.s32.totalorder %s2879_s18, 1  ;;  %s2879_s18 = sphi %s2917_s18, %s15_s18  }
   0x2   : > { %p187_p1 = scmp.lt.s32.totalorder %s2879_s18, 3 }
   0x4   : > { %p188_p2 = pnand %p2462_p0, %p187_p1 }
   0x5   : > { %p215_p3 = scmp.lt.s32.totalorder (!%p188_p2), %s2458_s19, 1  ;;  %s2881_s24 = smov (!%p188_p2), 16   ;;  %v225_v2 = vlaneseq (!%p188_p2)  ;;  %v2885_v9 = vmov (!%p188_p2), 0.0   ;;  %vm397_vm4 = vcmask (!%p188_p2), 1043456   ;;  %v269_v22 = vld [vmem:[%s3802_s1 + $0x40] sm:$0xff] (!%p188_p2)  ;;  %vm384_vm6 = vcmask (!%p188_p2), 31744  }
   0x6   : > { %191 = sbr.rel (%p188_p2) target bundleno = 1171 (0x493), region = 40  ;;  %s2882_s25 = smov (!%p188_p2), 112   ;;  %698 = vmatprep.mubr.f32.mxu0 (!%p188_p2), %v2885_v9  ;;  %468 = vmatprep.mubr.f32.mxu1 (!%p188_p2), %v2885_v9  ;;  %v270_v27 = vld [vmem:[%s3802_s1 + $0x48] sm:$0xff] (!%p188_p2)  ;;  %v271_v34 = vld [vmem:[%s3802_s1 + $0x50] sm:$0xff] (!%p188_p2)  ;;  %v272_v37 = vld [vmem:[%s3802_s1 + $0x58] sm:$0xff] (!%p188_p2)  ;;  %v2886_v53 = vmov (!%p188_p2), 0  }
   0x7   : > { %s2883_s26 = smov (!%p188_p2), 1   ;;  %s2884_s27 = smov (!%p188_p2), 127   ;;  %v2949_v3 = vand.u32 (!%p188_p2), 127, %v225_v2  ;;  %v273_v41 = vld [vmem:[%s3802_s1 + $0x60] sm:$0xff] (!%p188_p2)  ;;  %v274_v43 = vld [vmem:[%s3802_s1 + $0x68] sm:$0xff] (!%p188_p2)  ;;  %v275_v44 = vld [vmem:[%s3802_s1 + $0x70] sm:$0xff] (!%p188_p2)  ;;  %2710 = vset.pattern.permute.xlu0 (!%p188_p2), %v2886_v53  ;;  %2711 = vset.pattern.permute.xlu1 (!%p188_p2), %v2886_v53 }
   0x8   : > { %v276_v45 = vld [vmem:[%s3802_s1 + $0x78] sm:$0xff] (!%p188_p2)  ;;  %v277_v47 = vld [vmem:[%s3802_s1 + $0x80] sm:$0xff] (!%p188_p2)  ;;  %v278_v49 = vld [vmem:[%s3802_s1 + $0x88] sm:$0xff] (!%p188_p2)  ;;  %vm1585_vm11 = vcmask (!%p188_p2), 261120  }
   0x9   : > { %vm252_vm0 = vcmp.lt.s32.totalorder (!%p188_p2), %v2949_v3, 16  ;;  %v2976_v10 = vadd.s32 (!%p188_p2), 128, %v2949_v3  ;;  %v232_v12 = vand.u32 (!%p188_p2), 15, %v2949_v3  ;;  %vm375_vm1 = vcmp.lt.s32.totalorder (!%p188_p2), %v2949_v3, 127  ;;  %v279_v50 = vld [vmem:[%s3802_s1 + $0x90] sm:$0xff] (!%p188_p2)  ;;  %v306_v51 = vld [vmem:[%s3803_s2] sm:$0xff] (!%p188_p2) }
   0xa   : > { %vm349_vm5 = vcmp.lt.s32.totalorder (!%p188_p2), %v2949_v3, 112  ;;  %vm362_vm8 = vcmp.lt.s32.totalorder (!%p188_p2), %v2949_v3, 1  ;;  %v307_v52 = vld [vmem:[%s3803_s2 + $0x8] sm:$0xff] (!%p188_p2)  ;;  %v308_v54 = vld [vmem:[%s3803_s2 + $0x10] sm:$0xff] (!%p188_p2)  ;;  %v309_v55 = vld [vmem:[%s3803_s2 + $0x18] sm:$0xff] (!%p188_p2) }
   0xb   : > { %v239_v11 = vand.u32 (!%p188_p2), 15, %v2976_v10  ;;  %vm2985_vm3 = vcmp.eq.s32.totalorder (!%p188_p2), %v232_v12, 15  ;;  %vm255_vm7 = vcmp.ge.s32.totalorder (!%p188_p2), %v2976_v10, 240  ;;  %vm3027_vm9 = vcmp.eq.s32.totalorder (!%p188_p2), %v232_v12, 0  ;;  %v280_v56 = vld [vmem:[%s3802_s1 + $0x98] sm:$0xff] (!%p188_p2)  ;;  %v281_v57 = vld [vmem:[%s3802_s1 + $0xa0] sm:$0xff] (!%p188_p2) }
   0xc   : > { %v282_v58 = vld [vmem:[%s3802_s1 + $0xa8] sm:$0xff] (!%p188_p2)  ;;  %v283_v59 = vld [vmem:[%s3802_s1 + $0xb0] sm:$0xff] (!%p188_p2)  ;;  %v284_v60 = vld [vmem:[%s3802_s1 + $0xb8] sm:$0xff] (!%p188_p2) }
   0xd   : > { %s3816_s19 = smov (!%p215_p3, %s2458_s19), 1  ;;  %vm2981_vm2 = vcmp.eq.s32.totalorder %v239_v11, 15  ;;  %vm3031_vm10 = vcmp.eq.s32.totalorder %v239_v11, 0 }
   0xe   : > { %s2532_s20 = sshll.u32 %s3816_s19, 3 }
   0xf   : > { %s219_s23 = scalar_lea.vmem %s3801_s0, %s2532_s20 }
  0x10   : > { %v2933_v0 = vld [vmem:[%s219_s23] sm:$0xff] }
  0x11   : > { %333 = vrot.lane.b32.xlu0 %v2933_v0, %s2881_s24  ;;  %v2939_v1 = vcombine.high %v2933_v0, %v2933_v0 }
  0x15   : > { %335 = vrot.lane.b32.xlu0 %v2939_v1, %s2881_s24 }
  0x19   : > { %345 = vrot.lane.b32.xlu0 %v2933_v0, %s2882_s25 }
  0x1d   : > { %731 = vrot.lane.b32.xlu0 %v2933_v0, %s2883_s26 }
  0x21   : > { %739 = vrot.lane.b32.xlu0 %v2933_v0, %s2884_s27 }
  0x83   : > { %v334_v4 = vpop.permute.xlu0 %333 }
  0x87   : > { %v336_v5 = vpop.permute.xlu0 %335 }
  0x88   : > { %v2954_v6 = vsel %vm252_vm0, %v334_v4, %v336_v5  ;;  %v338_v7 = vsel %vm252_vm0, %v336_v5, %v334_v4  ;;  %v285_v4 = vld [vmem:[%s3802_s1 + $0xc0] sm:$0xff] }
  0x89   : > { %373 = vrot.lane.b32.xlu1 %v2954_v6, %s2884_s27  ;;  %v2963_v8 = vsel %vm252_vm0, %v2933_v0, %v338_v7 }
  0x8b   : > { %v346_v21 = vpop.permute.xlu0 %345 }
  0x8d   : > { %371 = vrot.lane.b32.xlu1 %v2963_v8, %s2884_s27 }
  0x8f   : > { %v732_v28 = vpop.permute.xlu0 %731 }
  0x91   : > { %347 = vrot.lane.b32.xlu1 %v2939_v1, %s2882_s25 }
  0x93   : > { %v740_v39 = vpop.permute.xlu0 %739 }
  0x95   : > { %733 = vrot.lane.b32.xlu1 %v2939_v1, %s2883_s26 }
  0x99   : > { %741 = vrot.lane.b32.xlu1 %v2939_v1, %s2884_s27 }
  0xfb   : > { %v374_v13 = vpop.permute.xlu1 %373 }
  0xff   : > { %v372_v16 = vpop.permute.xlu1 %371 }
 0x100   : > { %v376_v17 = vsel %vm375_vm1, %v372_v16, %v374_v13  ;;  %v377_v18 = vsel %vm375_vm1, %v374_v13, %v372_v16 }
 0x101   : > { %v383_v19 = vsel %vm2981_vm2, %v2954_v6, %v377_v18  ;;  %v382_v20 = vsel %vm2985_vm3, %v2963_v8, %v376_v17  ;;  %v286_v17 = vld [vmem:[%s3802_s1 + $0xc8] sm:$0xff] }
 0x102   : > { %2479 = vmatprep.subr.msk.mxu0 %vm397_vm4, %v383_v19  ;;  %v261_v19 = vld [vmem:[%s3802_s1] sm:$0xff] }
 0x103   : > { %2480 = vmatpush1.msk.msra.mxu0 %vm397_vm4, %v382_v20  ;;  %v348_v23 = vpop.permute.xlu1 %347 }
 0x104   : > { %v3008_v24 = vsel %vm349_vm5, %v346_v21, %v348_v23  ;;  %v351_v25 = vsel %vm349_vm5, %v348_v23, %v346_v21  ;;  %2481 = vmatmul.mubr.msk.f32.vlgmr.msra.gmra.mrb[0].mxu0 %vm384_vm6, %v269_v22  ;;  %v287_v23 = vld [vmem:[%s3802_s1 + $0xd0] sm:$0xff] }
 0x105   : > { %v3017_v26 = vsel %vm255_vm7, %v2939_v1, %v351_v25  ;;  %1090 = vrot.lane.b32.xlu0 %v3008_v24, %s2883_s26  ;;  %704 = vmatprep.mubr.f32.mxu0 %v2885_v9  ;;  %v288_v25 = vld [vmem:[%s3802_s1 + $0xd8] sm:$0xff] }
 0x106   : > { %1092 = vrot.lane.b32.xlu1 %v3017_v26, %s2883_s26 }
 0x107   : > { %v734_v31 = vpop.permute.xlu1 %733 }
 0x108   : > { %2482 = vmatmul.mubr.msk.f32.gmra.mrb[2].mxu0 %vm384_vm6, %v270_v27  ;;  %v735_v32 = vsel %vm362_vm8, %v732_v28, %v734_v31  ;;  %v736_v33 = vsel %vm362_vm8, %v734_v31, %v732_v28  ;;  %v289_v27 = vld [vmem:[%s3802_s1 + $0xe0] sm:$0xff]  ;;  %v264_v28 = vld [vmem:[%s3802_s1 + $0x18] sm:$0xff] }
 0x109   : > { %358 = vrot.lane.b32.xlu0 %v2963_v8, %s2883_s26  ;;  %710 = vmatprep.mubr.f32.mxu0 %v2885_v9  ;;  %v737_v35 = vsel %vm3027_vm9, %v2933_v0, %v736_v33  ;;  %v738_v36 = vsel %vm3031_vm10, %v2939_v1, %v735_v32  ;;  %v290_v32 = vld [vmem:[%s3802_s1 + $0xe8] sm:$0xff]  ;;  %v265_v33 = vld [vmem:[%s3802_s1 + $0x20] sm:$0xff] }
 0x10a   : > { %360 = vrot.lane.b32.xlu1 %v2954_v6, %s2883_s26  ;;  %2485 = vmatprep.subr.msk.mxu0 %vm397_vm4, %v738_v36  ;;  %v267_v36 = vld [vmem:[%s3802_s1 + $0x30] sm:$0xff] }
 0x10b   : > { %2486 = vmatpush1.msk.msra.mxu0 %vm397_vm4, %v737_v35  ;;  %v742_v38 = vpop.permute.xlu1 %741  ;;  %v292_v35 = vld [vmem:[%s3802_s1 + $0xf8] sm:$0xff] }
 0x10c   : > { %2483 = vmatmul.mubr.msk.f32.gmra.mrb[4].mxu0 %vm384_vm6, %v271_v34  ;;  %2491 = vmatprep.subr.msk.mxu0 %vm397_vm4, %v2939_v1  ;;  %v744_v40 = vsel %vm375_vm1, %v742_v38, %v740_v39  ;;  %v743_v46 = vsel %vm375_vm1, %v740_v39, %v742_v38  ;;  %v266_v34 = vld [vmem:[%s3802_s1 + $0x28] sm:$0xff]  ;;  %v268_v38 = vld [vmem:[%s3802_s1 + $0x38] sm:$0xff] }
 0x10d   : > { %1098 = vrot.lane.b32.xlu0 %v3008_v24, %s2884_s27  ;;  %716 = vmatprep.mubr.f32.mxu0 %v2885_v9  ;;  %v746_v42 = vsel %vm2981_vm2, %v2939_v1, %v744_v40  ;;  %v745_v48 = vsel %vm2985_vm3, %v2933_v0, %v743_v46  ;;  %v294_v39 = vld [vmem:[%s3802_s1 + $0x108] sm:$0xff]  ;;  %v295_v40 = vld [vmem:[%s3802_s1 + $0x110] sm:$0xff] }
 0x10e   : > { %1100 = vrot.lane.b32.xlu1 %v3017_v26, %s2884_s27 }
 0x110   : > { %2484 = vmatmul.mubr.msk.f32.gmra.mrb[6].mxu0 %vm384_vm6, %v272_v37  ;;  %v293_v37 = vld [vmem:[%s3802_s1 + $0x100] sm:$0xff] }
 0x111   : > { %829 = vmatprep.mubr.f32.mxu0 %v2885_v9  ;;  %312 = vperm.xlu0 %2710, %v306_v51  }
 0x112   : > { %317 = vperm.xlu1 %2711, %v307_v52  }
 0x114   : > { %2487 = vmatmul.mubr.msk.f32.vlgmr.msra.gmra.mrb[0].mxu0 %vm384_vm6, %v273_v41  ;;  %v296_v41 = vld [vmem:[%s3802_s1 + $0x118] sm:$0xff] }
 0x115   : > { %835 = vmatprep.mubr.f32.mxu0 %v2885_v9  ;;  %2492 = vmatpush1.msk.msra.mxu0 %vm397_vm4, %v2933_v0 }
 0x116   : > { %2497 = vmatprep.subr.msk.mxu0 %vm397_vm4, %v746_v42  ;;  %322 = vperm.xlu1 %2711, %v308_v54  }
 0x117   : > { %327 = vperm.xlu0 %2710, %v309_v55  }
 0x118   : > { %2488 = vmatmul.mubr.msk.f32.gmra.mrb[2].mxu0 %vm384_vm6, %v274_v43 }
 0x119   : > { %841 = vmatprep.mubr.f32.mxu0 %v2885_v9 }
 0x11c   : > { %2489 = vmatmul.mubr.msk.f32.gmra.mrb[4].mxu0 %vm384_vm6, %v275_v44 }
 0x11d   : > { %847 = vmatprep.mubr.f32.mxu0 %v2885_v9 }
 0x120   : > { %2490 = vmatmul.mubr.msk.f32.gmra.mrb[6].mxu0 %vm384_vm6, %v276_v45 }
 0x121   : > { %942 = vmatprep.mubr.f32.mxu0 %v2885_v9 }
 0x124   : > { %2493 = vmatmul.mubr.msk.f32.vlgmr.msra.gmra.mrb[0].mxu0 %vm384_vm6, %v277_v47 }
 0x125   : > { %948 = vmatprep.mubr.f32.mxu0 %v2885_v9  ;;  %2498 = vmatpush1.msk.msra.mxu0 %vm397_vm4, %v745_v48 }
 0x128   : > { %2494 = vmatmul.mubr.msk.f32.gmra.mrb[2].mxu0 %vm384_vm6, %v278_v49 }
 0x129   : > { %954 = vmatprep.mubr.f32.mxu0 %v2885_v9 }
 0x12c   : > { %2495 = vmatmul.mubr.msk.f32.gmra.mrb[4].mxu0 %vm384_vm6, %v279_v50 }
 0x12d   : > { %960 = vmatprep.mubr.f32.mxu0 %v2885_v9 }
 0x130   : > { %2496 = vmatmul.mubr.msk.f32.gmra.mrb[6].mxu0 %vm384_vm6, %v280_v56 }
 0x131   : > { %1057 = vmatprep.mubr.f32.mxu0 %v2885_v9 }
 0x134   : > { %2499 = vmatmul.mubr.msk.f32.vlgmr.msra.gmra.mrb[0].mxu0 %vm384_vm6, %v281_v57 }
 0x135   : > { %1063 = vmatprep.mubr.f32.mxu0 %v2885_v9 }
 0x138   : > { %2500 = vmatmul.mubr.msk.f32.gmra.mrb[2].mxu0 %vm384_vm6, %v282_v58 }
 0x139   : > { %1069 = vmatprep.mubr.f32.mxu0 %v2885_v9 }
 0x13c   : > { %2501 = vmatmul.mubr.msk.f32.gmra.mrb[4].mxu0 %vm384_vm6, %v283_v59 }
 0x13d   : > { %1075 = vmatprep.mubr.f32.mxu0 %v2885_v9 }
 0x140   : > { %2502 = vmatmul.mubr.msk.f32.gmra.mrb[6].mxu0 %vm384_vm6, %v284_v60 }
 0x141   : > { %1188 = vmatprep.mubr.f32.mxu0 %v2885_v9 }
 0x177   : > { %v1091_v61 = vpop.permute.xlu0 %1090 }
 0x178   : > { %v1093_v62 = vpop.permute.xlu1 %1092 }
 0x179   : > { %v1094_v63 = vsel %vm362_vm8, %v1091_v61, %v1093_v62  ;;  %v1095_v0 = vsel %vm362_vm8, %v1093_v62, %v1091_v61 }
 0x17a   : > { %v1096_v1 = vsel %vm3027_vm9, %v3008_v24, %v1095_v0  ;;  %v1097_v2 = vsel %vm3031_vm10, %v3017_v26, %v1094_v63 }
 0x17b   : > { %2503 = vmatprep.subr.msk.mxu0 %vm397_vm4, %v1097_v2  ;;  %v359_v5 = vpop.permute.xlu0 %358 }
 0x17c   : > { %v361_v7 = vpop.permute.xlu1 %360  ;;  %2504 = vmatpush1.msk.msra.mxu0 %vm397_vm4, %v1096_v1 }
 0x17d   : > { %v363_v11 = vsel %vm362_vm8, %v359_v5, %v361_v7  ;;  %v364_v12 = vsel %vm362_vm8, %v361_v7, %v359_v5  ;;  %2505 = vmatmul.mubr.msk.f32.vlgmr.msra.gmra.mrb[0].mxu0 %vm384_vm6, %v285_v4  ;;  %2509 = vmatprep.subr.msk.mxu0 %vm397_vm4, %v3017_v26 }
 0x17e   : > { %2510 = vmatpush1.msk.msra.mxu0 %vm397_vm4, %v3008_v24  ;;  %v370_v13 = vsel %vm3031_vm10, %v2954_v6, %v363_v11  ;;  %v369_v16 = vsel %vm3027_vm9, %v2963_v8, %v364_v12  ;;  %1194 = vmatprep.mubr.f32.mxu0 %v2885_v9 }
 0x17f   : > { %2467 = vmatprep.subr.msk.mxu1 %vm397_vm4, %v370_v13  ;;  %v1099_v18 = vpop.permute.xlu0 %1098 }
 0x180   : > { %v1101_v20 = vpop.permute.xlu1 %1100  ;;  %2468 = vmatpush1.msk.msra.mxu1 %vm397_vm4, %v369_v16 }
 0x181   : > { %v1103_v21 = vsel %vm375_vm1, %v1101_v20, %v1099_v18  ;;  %2473 = vmatprep.subr.msk.mxu1 %vm397_vm4, %v2954_v6  ;;  %2506 = vmatmul.mubr.msk.f32.gmra.mrb[2].mxu0 %vm384_vm6, %v286_v17  ;;  %v262_v6 = vld [vmem:[%s3802_s1 + $0x8] sm:$0xff] }
 0x182   : > { %2469 = vmatmul.mubr.msk.f32.vlgmr.msra.gmra.mrb[0].mxu1 %vm384_vm6, %v261_v19  ;;  %v1105_v22 = vsel %vm2981_vm2, %v3017_v26, %v1103_v21  ;;  %1200 = vmatprep.mubr.f32.mxu0 %v2885_v9  ;;  %v1102_v26 = vsel %vm375_vm1, %v1099_v18, %v1101_v20 }
 0x183   : > { %2474 = vmatpush1.msk.msra.mxu1 %vm397_vm4, %v2963_v8  ;;  %2515 = vmatprep.subr.msk.mxu0 %vm397_vm4, %v1105_v22  ;;  %v263_v8 = vld [vmem:[%s3802_s1 + $0x10] sm:$0xff]  ;;  %v1104_v31 = vsel %vm2985_vm3, %v3008_v24, %v1102_v26 }
 0x184   : > { %474 = vmatprep.mubr.f32.mxu1 %v2885_v9  ;;  %v291_v24 = vld [vmem:[%s3802_s1 + $0xf0] sm:$0xff] }
 0x185   : > { %2507 = vmatmul.mubr.msk.f32.gmra.mrb[4].mxu0 %vm384_vm6, %v287_v23 }
 0x186   : > { %2470 = vmatmul.mubr.msk.f32.gmra.mrb[2].mxu1 %vm384_vm6, %v262_v6  ;;  %1206 = vmatprep.mubr.f32.mxu0 %v2885_v9 }
 0x187   : > { %480 = vmatprep.mubr.f32.mxu1 %v2885_v9 }
 0x189   : > { %2508 = vmatmul.mubr.msk.f32.gmra.mrb[6].mxu0 %vm384_vm6, %v288_v25 }
 0x18a   : > { %2471 = vmatmul.mubr.msk.f32.gmra.mrb[4].mxu1 %vm384_vm6, %v263_v8  ;;  %1303 = vmatprep.mubr.f32.mxu0 %v2885_v9 }
 0x18b   : > { %486 = vmatprep.mubr.f32.mxu1 %v2885_v9 }
 0x18d   : > { %2511 = vmatmul.mubr.msk.f32.vlgmr.msra.gmra.mrb[0].mxu0 %vm384_vm6, %v289_v27 }
 0x18e   : > { %2516 = vmatpush1.msk.msra.mxu0 %vm397_vm4, %v1104_v31  ;;  %2472 = vmatmul.mubr.msk.f32.gmra.mrb[6].mxu1 %vm384_vm6, %v264_v28 }
 0x18f   : > { %1309 = vmatprep.mubr.f32.mxu0 %v2885_v9  ;;  %583 = vmatprep.mubr.f32.mxu1 %v2885_v9 }
 0x190   : > { %v313_v46 = vpop.permute.xlu0 %312 }
 0x191   : > { %2512 = vmatmul.mubr.msk.f32.gmra.mrb[2].mxu0 %vm384_vm6, %v290_v32  ;;  %v318_v48 = vpop.permute.xlu1 %317 }
 0x192   : > { %2475 = vmatmul.mubr.msk.f32.vlgmr.msra.gmra.mrb[0].mxu1 %vm384_vm6, %v265_v33  ;;  %1315 = vmatprep.mubr.f32.mxu0 %v2885_v9 }
 0x193   : > { %589 = vmatprep.mubr.f32.mxu1 %v2885_v9 }
 0x195   : > { %2513 = vmatmul.mubr.msk.f32.gmra.mrb[4].mxu0 %vm384_vm6, %v291_v24  ;;  %v323_v60 = vpop.permute.xlu1 %322 }
 0x196   : > { %2476 = vmatmul.mubr.msk.f32.gmra.mrb[2].mxu1 %vm384_vm6, %v266_v34  ;;  %1321 = vmatprep.mubr.f32.mxu0 %v2885_v9  ;;  %v328_v5 = vpop.permute.xlu0 %327 }
 0x197   : > { %595 = vmatprep.mubr.f32.mxu1 %v2885_v9 }
 0x199   : > { %2514 = vmatmul.mubr.msk.f32.gmra.mrb[6].mxu0 %vm384_vm6, %v292_v35 }
 0x19a   : > { %2477 = vmatmul.mubr.msk.f32.gmra.mrb[4].mxu1 %vm384_vm6, %v267_v36  ;;  %1418 = vmatprep.mubr.f32.mxu0 %v2885_v9 }
 0x19b   : > { %601 = vmatprep.mubr.f32.mxu1 %v2885_v9 }
 0x19d   : > { %2517 = vmatmul.mubr.msk.f32.vlgmr.msra.gmra.mrb[0].mxu0 %vm384_vm6, %v293_v37 }
 0x19e   : > { %2478 = vmatmul.mubr.msk.f32.gmra.mrb[6].mxu1 %vm384_vm6, %v268_v38  ;;  %1424 = vmatprep.mubr.f32.mxu0 %v2885_v9 }
 0x19f   : > { %1653 = vmatprep.mubr.f32.mxu1 %v2885_v9 }
 0x1a1   : > { %2518 = vmatmul.mubr.msk.f32.gmra.mrb[2].mxu0 %vm384_vm6, %v294_v39 }
 0x1a2   : > { %1430 = vmatprep.mubr.f32.mxu0 %v2885_v9 }
 0x1a5   : > { %2519 = vmatmul.mubr.msk.f32.gmra.mrb[4].mxu0 %vm384_vm6, %v295_v40 }
 0x1a6   : > { %1436 = vmatprep.mubr.f32.mxu0 %v2885_v9 }
 0x1a9   : > { %2520 = vmatmul.mubr.msk.f32.gmra.mrb[6].mxu0 %vm384_vm6, %v296_v41 }
 0x265   : > { %v585_v42 = vpop.f32.mrb[0].mxu1 }
 0x266   : > { %v587_v43 = vpop.f32.mrb[1].mxu1  ;;  %v2606_v50 = vadd.f32 %v585_v42, %v313_v46 }
 0x267   : > { %v2608_v51 = vadd.f32 %v587_v43, %v313_v46 }
 0x269   : > { %v591_v44 = vpop.f32.mrb[2].mxu1 }
 0x26a   : > { %v593_v45 = vpop.f32.mrb[3].mxu1  ;;  %v2610_v58 = vadd.f32 %v591_v44, %v318_v48 }
 0x26b   : > { %v2612_v59 = vadd.f32 %v593_v45, %v318_v48 }
 0x26d   : > { %v597_v47 = vpop.f32.mrb[4].mxu1 }
 0x26e   : > { %v599_v49 = vpop.f32.mrb[5].mxu1  ;;  %v2614_v1 = vadd.f32 %v597_v47, %v323_v60 }
 0x26f   : > { %v2616_v4 = vadd.f32 %v599_v49, %v323_v60 }
 0x270   : > { %v1420_v52 = vpop.f32.mrb[0].mxu0 }
 0x271   : > { %v3298_v53 = vadd.f32 %v2606_v50, %v1420_v52  ;;  %v1422_v54 = vpop.f32.mrb[1].mxu0  ;;  %v603_v55 = vpop.f32.mrb[6].mxu1 }
 0x272   : > { %v3300_v56 = vadd.f32 %v2608_v51, %v1422_v54  ;;  %v605_v57 = vpop.f32.mrb[7].mxu1  ;;  %v2618_v17 = vadd.f32 %v603_v55, %v328_v5 }
 0x273   : > { %v2620_v18 = vadd.f32 %v605_v57, %v328_v5 }
 0x274   : > { %v1426_v61 = vpop.f32.mrb[2].mxu0 }
 0x275   : > { %v3302_v62 = vadd.f32 %v2610_v58, %v1426_v61  ;;  %v1428_v63 = vpop.f32.mrb[3].mxu0 }
 0x276   : > { %v3304_v0 = vadd.f32 %v2612_v59, %v1428_v63 }
 0x277   : > { %v3308_v2 = vpack.i.bf16 %v3302_v62, %v3298_v53 }
 0x278   : > { %v1432_v7 = vpop.f32.mrb[4].mxu0  ;;  %v3312_v11 = vpack.i.bf16 %v3304_v0, %v3300_v56 }
 0x279   : > { %v3314_v12 = vadd.f32 %v2614_v1, %v1432_v7  ;;  %v1434_v13 = vpop.f32.mrb[5].mxu0  ;;  %2713 = vrot.lane.b32.xlu1 %v3308_v2, %s2881_s24 }
 0x27a   : > { %v3318_v16 = vadd.f32 %v2616_v4, %v1434_v13  ;;  %2718 = vrot.lane.b32.xlu0 %v3312_v11, %s2881_s24 }
 0x27c   : > { %v1438_v19 = vpop.f32.mrb[6].mxu0 }
 0x27d   : > { %v3322_v20 = vadd.f32 %v2618_v17, %v1438_v19  ;;  %v1440_v21 = vpop.f32.mrb[7].mxu0 }
 0x27e   : > { %v3324_v22 = vadd.f32 %v2620_v18, %v1440_v21 }
 0x27f   : > { %v3328_v23 = vpack.i.bf16 %v3322_v20, %v3314_v12 }
 0x280   : > { %v3332_v6 = vpack.i.bf16 %v3324_v22, %v3318_v16 }
 0x281   : > { %2723 = vrot.lane.b32.xlu1 %v3328_v23, %s2881_s24 }
 0x282   : > { %2728 = vrot.lane.b32.xlu0 %v3332_v6, %s2881_s24  ;;  %s224_s24 = scalar_lea.vmem %s3806_s5, %s2532_s20 }
 0x285   : > { %2733 = vrot.lane.b32.xlu1 %v3308_v2, %s2882_s25 }
 0x286   : > { %2738 = vrot.lane.b32.xlu0 %v3312_v11, %s2882_s25 }
 0x289   : > { %2743 = vrot.lane.b32.xlu1 %v3328_v23, %s2882_s25 }
 0x28a   : > { %2748 = vrot.lane.b32.xlu0 %v3332_v6, %s2882_s25 }
 0x2eb   : > { %v2714_v25 = vpop.permute.xlu1 %2713 }
 0x2ec   : > { %v2716_v8 = vunpack.i.h.bf16 %v2714_v25  ;;  %v2715_v26 = vunpack.i.l.bf16 %v2714_v25  ;;  %v2719_v27 = vpop.permute.xlu0 %2718 }
 0x2ed   : > { %v2721_v28 = vunpack.i.h.bf16 %v2719_v27  ;;  %v2720_v31 = vunpack.i.l.bf16 %v2719_v27 }
 0x2ef   : > { %v3348_v32 = vsel %vm252_vm0, %v2716_v8, %v2721_v28  ;;  %v1478_v33 = vsel %vm252_vm0, %v2721_v28, %v2716_v8  ;;  %v3354_v24 = vsel %vm252_vm0, %v2715_v26, %v2720_v31  ;;  %v1477_v34 = vsel %vm252_vm0, %v2720_v31, %v2715_v26 }
 0x2f0   : > { %v3361_v35 = vsel %vm252_vm0, %v3302_v62, %v1478_v33  ;;  %v3366_v36 = vsel %vm252_vm0, %v3298_v53, %v1477_v34  ;;  %v2752_v37 = vpack.i.bf16 %v3348_v32, %v3354_v24  ;;  %v1451_v33 = vld [vmem:[%s3805_s4] sm:$0xf] }
 0x2f1   : > { %v2757_v38 = vpack.i.bf16 %v3361_v35, %v3366_v36 }
 0x2f2   : > { %2753 = vrot.lane.b32.xlu0 %v2752_v37, %s2883_s26 }
 0x2f3   : > { %v2724_v39 = vpop.permute.xlu1 %2723  ;;  %2758 = vrot.lane.b32.xlu1 %v2757_v38, %s2883_s26 }
 0x2f4   : > { %v2726_v40 = vunpack.i.h.bf16 %v2724_v39  ;;  %v2725_v41 = vunpack.i.l.bf16 %v2724_v39  ;;  %v2729_v42 = vpop.permute.xlu0 %2728 }
 0x2f5   : > { %v2731_v43 = vunpack.i.h.bf16 %v2729_v42  ;;  %v2730_v44 = vunpack.i.l.bf16 %v2729_v42 }
 0x2f7   : > { %v3376_v45 = vsel %vm252_vm0, %v2726_v40, %v2731_v43  ;;  %v1480_v46 = vsel %vm252_vm0, %v2731_v43, %v2726_v40  ;;  %v3382_v47 = vsel %vm252_vm0, %v2725_v41, %v2730_v44  ;;  %v1479_v48 = vsel %vm252_vm0, %v2730_v44, %v2725_v41  ;;  %v2734_v54 = vpop.permute.xlu1 %2733 }
 0x2f8   : > { %v3389_v49 = vsel %vm252_vm0, %v3322_v20, %v1480_v46  ;;  %v3394_v50 = vsel %vm252_vm0, %v3314_v12, %v1479_v48  ;;  %v2767_v51 = vpack.i.bf16 %v3376_v45, %v3382_v47  ;;  %v2739_v55 = vpop.permute.xlu0 %2738  ;;  %v2736_v57 = vunpack.i.h.bf16 %v2734_v54 }
 0x2f9   : > { %v2762_v52 = vpack.i.bf16 %v3389_v49, %v3394_v50  ;;  %v2735_v58 = vunpack.i.l.bf16 %v2734_v54  ;;  %v2741_v59 = vunpack.i.h.bf16 %v2739_v55  ;;  %v2740_v60 = vunpack.i.l.bf16 %v2739_v55 }
 0x2fa   : > { %2768 = vrot.lane.b32.xlu0 %v2767_v51, %s2883_s26 }
 0x2fb   : > { %2763 = vrot.lane.b32.xlu1 %v2762_v52, %s2883_s26  ;;  %v2744_v61 = vpop.permute.xlu1 %2743  ;;  %v1510_v1 = vsel %vm349_vm5, %v2741_v59, %v2736_v57  ;;  %v1509_v4 = vsel %vm349_vm5, %v2740_v60, %v2735_v58  ;;  %v3434_v21 = vsel %vm349_vm5, %v2736_v57, %v2741_v59 }
 0x2fc   : > { %v2749_v63 = vpop.permute.xlu0 %2748  ;;  %v2746_v5 = vunpack.i.h.bf16 %v2744_v61  ;;  %v2745_v7 = vunpack.i.l.bf16 %v2744_v61  ;;  %v3425_v18 = vsel %vm255_vm7, %v3304_v0, %v1510_v1  ;;  %v3430_v19 = vsel %vm255_vm7, %v3300_v56, %v1509_v4 }
 0x2fd   : > { %v2751_v13 = vunpack.i.h.bf16 %v2749_v63  ;;  %v2750_v17 = vunpack.i.l.bf16 %v2749_v63  ;;  %v2837_v8 = vpack.i.bf16 %v3425_v18, %v3430_v19 }
 0x2fe   : > { %2778 = vrot.lane.b32.xlu0 %v2752_v37, %s2884_s27 }
 0x2ff   : > { %2773 = vrot.lane.b32.xlu1 %v2757_v38, %s2884_s27  ;;  %v1511_v25 = vsel %vm349_vm5, %v2750_v17, %v2745_v7 }
 0x300   : > { %v3458_v27 = vsel %vm255_vm7, %v3318_v16, %v1511_v25 }
 0x302   : > { %2783 = vrot.lane.b32.xlu0 %v2767_v51, %s2884_s27 }
 0x303   : > { %2788 = vrot.lane.b32.xlu1 %v2762_v52, %s2884_s27 }
 0x306   : > { %2798 = vrot.lane.b32.xlu0 %v3312_v11, %s2883_s26 }
 0x307   : > { %2793 = vrot.lane.b32.xlu1 %v3308_v2, %s2883_s26 }
 0x30a   : > { %2808 = vrot.lane.b32.xlu0 %v3332_v6, %s2883_s26 }
 0x30b   : > { %2803 = vrot.lane.b32.xlu1 %v3328_v23, %s2883_s26 }
 0x30e   : > { %2818 = vrot.lane.b32.xlu0 %v3312_v11, %s2884_s27  ;;  %v3438_v11 = vsel %vm349_vm5, %v2735_v58, %v2740_v60 }
 0x30f   : > { %2813 = vrot.lane.b32.xlu1 %v3308_v2, %s2884_s27  ;;  %v1512_v2 = vsel %vm349_vm5, %v2751_v13, %v2746_v5  ;;  %v2832_v28 = vpack.i.bf16 %v3434_v21, %v3438_v11 }
 0x310   : > { %v3453_v26 = vsel %vm255_vm7, %v3324_v22, %v1512_v2 }
 0x311   : > { %v2847_v10 = vpack.i.bf16 %v3453_v26, %v3458_v27 }
 0x312   : > { %2828 = vrot.lane.b32.xlu0 %v3332_v6, %s2884_s27  ;;  %v3464_v6 = vsel %vm349_vm5, %v2746_v5, %v2751_v13 }
 0x313   : > { %2823 = vrot.lane.b32.xlu1 %v3328_v23, %s2884_s27  ;;  %v3468_v23 = vsel %vm349_vm5, %v2745_v7, %v2750_v17 }
 0x314   : > { %v2842_v31 = vpack.i.bf16 %v3464_v6, %v3468_v23 }
 0x316   : > { %2838 = vrot.lane.b32.xlu0 %v2837_v8, %s2883_s26 }
 0x317   : > { %2833 = vrot.lane.b32.xlu1 %v2832_v28, %s2883_s26 }
 0x31a   : > { %2848 = vrot.lane.b32.xlu0 %v2847_v10, %s2883_s26 }
 0x31b   : > { %2843 = vrot.lane.b32.xlu1 %v2842_v31, %s2883_s26 }
 0x31e   : > { %2858 = vrot.lane.b32.xlu0 %v2837_v8, %s2884_s27 }
 0x31f   : > { %2853 = vrot.lane.b32.xlu1 %v2832_v28, %s2884_s27 }
 0x322   : > { %2868 = vrot.lane.b32.xlu0 %v2847_v10, %s2884_s27 }
 0x323   : > { %2863 = vrot.lane.b32.xlu1 %v2842_v31, %s2884_s27 }
 0x327   : > { %1454 = vperm.xlu1 %2711, %v1451_v33  }
 0x364   : > { %v2754_v34 = vpop.permute.xlu0 %2753 }
 0x365   : > { %v2756_v37 = vunpack.i.h.bf16 %v2754_v34  ;;  %v2755_v38 = vunpack.i.l.bf16 %v2754_v34  ;;  %v2759_v39 = vpop.permute.xlu1 %2758 }
 0x366   : > { %v2761_v40 = vunpack.i.h.bf16 %v2759_v39  ;;  %v2760_v41 = vunpack.i.l.bf16 %v2759_v39 }
 0x368   : > { %v1537_v42 = vsel %vm362_vm8, %v2760_v41, %v2755_v38  ;;  %v1538_v43 = vsel %vm362_vm8, %v2761_v40, %v2756_v37  ;;  %v1541_v44 = vsel %vm362_vm8, %v2755_v38, %v2760_v41  ;;  %v1542_v46 = vsel %vm362_vm8, %v2756_v37, %v2761_v40 }
 0x369   : > { %v1546_v48 = vsel %vm3031_vm10, %v3354_v24, %v1537_v42  ;;  %v1548_v51 = vsel %vm3031_vm10, %v3348_v32, %v1538_v43  ;;  %v1545_v52 = vsel %vm3027_vm9, %v3366_v36, %v1541_v44  ;;  %v1547_v54 = vsel %vm3027_vm9, %v3361_v35, %v1542_v46  ;;  %v297_v46 = vld [vmem:[%s3804_s3] sm:$0xf] }
 0x36a   : > { %v2534_v55 = vpack.c.bf16 %v1548_v51, %v1546_v48  ;;  %v2536_v57 = vpack.c.bf16 %v1547_v54, %v1545_v52  ;;  %v2542_v42 = vpack.c.bf16 %v3348_v32, %v3354_v24 }
 0x36c   : > { %2535 = vmatprep.subr.bf16.mxu1 %v2534_v55  ;;  %v2769_v58 = vpop.permute.xlu0 %2768 }
 0x36d   : > { %2537 = vmatpush1.bf16.msra.mxu1 %v2536_v57  ;;  %v2771_v59 = vunpack.i.h.bf16 %v2769_v58  ;;  %v2770_v60 = vunpack.i.l.bf16 %v2769_v58  ;;  %v2764_v61 = vpop.permute.xlu1 %2763  ;;  %v2544_v58 = vpack.c.bf16 %v3361_v35, %v3366_v36 }
 0x36e   : > { %v2766_v63 = vunpack.i.h.bf16 %v2764_v61  ;;  %v2765_v1 = vunpack.i.l.bf16 %v2764_v61 }
 0x370   : > { %v1539_v4 = vsel %vm362_vm8, %v2765_v1, %v2770_v60  ;;  %v1540_v5 = vsel %vm362_vm8, %v2766_v63, %v2771_v59  ;;  %v1543_v7 = vsel %vm362_vm8, %v2770_v60, %v2765_v1  ;;  %v1544_v13 = vsel %vm362_vm8, %v2771_v59, %v2766_v63  ;;  %v2779_v17 = vpop.permute.xlu0 %2778 }
 0x371   : > { %v2774_v2 = vpop.permute.xlu1 %2773  ;;  %v1550_v25 = vsel %vm3031_vm10, %v3382_v47, %v1539_v4  ;;  %v1552_v8 = vsel %vm3031_vm10, %v3376_v45, %v1540_v5  ;;  %v2781_v28 = vunpack.i.h.bf16 %v2779_v17  ;;  %v1549_v31 = vsel %vm3027_vm9, %v3394_v50, %v1543_v7 }
 0x372   : > { %v2538_v10 = vpack.c.bf16 %v1552_v8, %v1550_v25  ;;  %v2780_v33 = vunpack.i.l.bf16 %v2779_v17  ;;  %v2776_v34 = vunpack.i.h.bf16 %v2774_v2  ;;  %v2775_v37 = vunpack.i.l.bf16 %v2774_v2 }
 0x373   : > { %v1551_v38 = vsel %vm3027_vm9, %v3389_v49, %v1544_v13  ;;  %v2546_v59 = vpack.c.bf16 %v3376_v45, %v3382_v47  ;;  %v2548_v8 = vpack.c.bf16 %v3389_v49, %v3394_v50 }
 0x374   : > { %v2784_v39 = vpop.permute.xlu0 %2783  ;;  %2539 = vmatprep.subr.bf16.mxu1 %v2538_v10  ;;  %v2540_v41 = vpack.c.bf16 %v1551_v38, %v1549_v31  ;;  %v1573_v43 = vsel %vm375_vm1, %v2780_v33, %v2775_v37  ;;  %v1574_v44 = vsel %vm375_vm1, %v2781_v28, %v2776_v34  ;;  %v1569_v60 = vsel %vm375_vm1, %v2775_v37, %v2780_v33 }
 0x375   : > { %v2789_v40 = vpop.permute.xlu1 %2788  ;;  %v2786_v48 = vunpack.i.h.bf16 %v2784_v39  ;;  %v2785_v51 = vunpack.i.l.bf16 %v2784_v39  ;;  %v1570_v61 = vsel %vm375_vm1, %v2776_v34, %v2781_v28  ;;  %v1578_v63 = vsel %vm2981_vm2, %v3354_v24, %v1573_v43 }
 0x376   : > { %2541 = vmatpush1.bf16.msra.mxu1 %v2540_v41  ;;  %v2791_v52 = vunpack.i.h.bf16 %v2789_v40  ;;  %v2790_v54 = vunpack.i.l.bf16 %v2789_v40  ;;  %v1580_v1 = vsel %vm2981_vm2, %v3348_v32, %v1574_v44  ;;  %v1577_v32 = vsel %vm2985_vm3, %v3366_v36, %v1569_v60  ;;  %v298_v36 = vld [vmem:[%s3804_s3 + $0x4] sm:$0xf] }
 0x377   : > { %2543 = vmatprep.subr.bf16.mxu1 %v2542_v42  ;;  %v2550_v31 = vpack.c.bf16 %v1580_v1, %v1578_v63  ;;  %v1579_v33 = vsel %vm2985_vm3, %v3361_v35, %v1570_v61  ;;  %v299_v1 = vld [vmem:[%s3804_s3 + $0x8] sm:$0xf] }
 0x378   : > { %v2799_v55 = vpop.permute.xlu0 %2798  ;;  %v1575_v17 = vsel %vm375_vm1, %v2785_v51, %v2790_v54  ;;  %v1576_v2 = vsel %vm375_vm1, %v2786_v48, %v2791_v52  ;;  %v1571_v28 = vsel %vm375_vm1, %v2790_v54, %v2785_v51  ;;  %v1572_v10 = vsel %vm375_vm1, %v2791_v52, %v2786_v48 }
 0x379   : > { %v2794_v57 = vpop.permute.xlu1 %2793  ;;  %2521 = vmatmul.mubr.msk.f32.vlgmr.msra.gmra.mrb[8].mxu1 %vm1585_vm11, %v297_v46  ;;  %v2801_v4 = vunpack.i.h.bf16 %v2799_v55  ;;  %v2800_v5 = vunpack.i.l.bf16 %v2799_v55  ;;  %v1582_v38 = vsel %vm2981_vm2, %v3382_v47, %v1575_v17  ;;  %v1584_v39 = vsel %vm2981_vm2, %v3376_v45, %v1576_v2 }
 0x37a   : > { %v2796_v7 = vunpack.i.h.bf16 %v2794_v57  ;;  %v2795_v13 = vunpack.i.l.bf16 %v2794_v57  ;;  %2545 = vmatpush1.bf16.msra.mxu1 %v2544_v58  ;;  %1729 = vmatprep.mubr.f32.mxu1 %v2885_v9  ;;  %v2552_v43 = vpack.c.bf16 %v1579_v33, %v1577_v32  ;;  %v2554_v46 = vpack.c.bf16 %v1584_v39, %v1582_v38  ;;  %v300_v39 = vld [vmem:[%s3804_s3 + $0xc] sm:$0xf] }
 0x37b   : > { %2547 = vmatprep.subr.bf16.mxu1 %v2546_v59  ;;  %v1581_v47 = vsel %vm2985_vm3, %v3394_v50, %v1571_v28  ;;  %v1583_v45 = vsel %vm2985_vm3, %v3389_v49, %v1572_v10  ;;  %v2566_v33 = vpack.c.bf16 %v3304_v0, %v3300_v56 }
 0x37c   : > { %v2809_v25 = vpop.permute.xlu0 %2808  ;;  %v1830_v34 = vsel %vm362_vm8, %v2795_v13, %v2800_v5  ;;  %v1831_v37 = vsel %vm362_vm8, %v2796_v7, %v2801_v4  ;;  %v1834_v44 = vsel %vm362_vm8, %v2800_v5, %v2795_v13  ;;  %v1835_v48 = vsel %vm362_vm8, %v2801_v4, %v2796_v7 }
 0x37d   : > { %v2804_v24 = vpop.permute.xlu1 %2803  ;;  %v2811_v35 = vunpack.i.h.bf16 %v2809_v25  ;;  %v2810_v40 = vunpack.i.l.bf16 %v2809_v25  ;;  %v1839_v54 = vsel %vm3031_vm10, %v3300_v56, %v1830_v34  ;;  %v1841_v55 = vsel %vm3031_vm10, %v3304_v0, %v1831_v37 }
 0x37e   : > { %2549 = vmatpush1.bf16.msra.mxu1 %v2548_v8  ;;  %v2806_v41 = vunpack.i.h.bf16 %v2804_v24  ;;  %v2805_v42 = vunpack.i.l.bf16 %v2804_v24  ;;  %v2556_v57 = vpack.c.bf16 %v1583_v45, %v1581_v47  ;;  %v2558_v58 = vpack.c.bf16 %v1841_v55, %v1839_v54 }
 0x37f   : > { %2551 = vmatprep.subr.bf16.mxu1 %v2550_v31  ;;  %v1838_v59 = vsel %vm3027_vm9, %v3298_v53, %v1834_v44  ;;  %v1840_v60 = vsel %vm3027_vm9, %v3302_v62, %v1835_v48  ;;  %v2570_v44 = vpack.c.bf16 %v3324_v22, %v3318_v16 }
 0x380   : > { %v2819_v51 = vpop.permute.xlu0 %2818  ;;  %v1832_v50 = vsel %vm362_vm8, %v2805_v42, %v2810_v40  ;;  %v1833_v49 = vsel %vm362_vm8, %v2806_v41, %v2811_v35  ;;  %v1836_v61 = vsel %vm362_vm8, %v2810_v40, %v2805_v42  ;;  %v1837_v63 = vsel %vm362_vm8, %v2811_v35, %v2806_v41 }
 0x381   : > { %2522 = vmatmul.mubr.msk.f32.vlgmr.msra.gmra.mrb[8].mxu1 %vm1585_vm11, %v298_v36  ;;  %v2814_v52 = vpop.permute.xlu1 %2813  ;;  %v1843_v4 = vsel %vm3031_vm10, %v3318_v16, %v1832_v50  ;;  %v1845_v5 = vsel %vm3031_vm10, %v3324_v22, %v1833_v49  ;;  %v2560_v17 = vpack.c.bf16 %v1840_v60, %v1838_v59  ;;  %v1842_v25 = vsel %vm3027_vm9, %v3314_v12, %v1836_v61 }
 0x382   : > { %2553 = vmatpush1.bf16.msra.mxu1 %v2552_v43  ;;  %1805 = vmatprep.mubr.f32.mxu1 %v2885_v9  ;;  %v2562_v2 = vpack.c.bf16 %v1845_v5, %v1843_v4  ;;  %v1844_v24 = vsel %vm3027_vm9, %v3322_v20, %v1837_v63  ;;  %v2821_v8 = vunpack.i.h.bf16 %v2819_v51  ;;  %v2820_v32 = vunpack.i.l.bf16 %v2819_v51 }
 0x383   : > { %2555 = vmatprep.subr.bf16.mxu1 %v2554_v46  ;;  %v2816_v28 = vunpack.i.h.bf16 %v2814_v52  ;;  %v2815_v10 = vunpack.i.l.bf16 %v2814_v52  ;;  %v2564_v31 = vpack.c.bf16 %v1844_v24, %v1842_v25  ;;  %v2568_v43 = vpack.c.bf16 %v3302_v62, %v3298_v53 }
 0x384   : > { %v2829_v7 = vpop.permute.xlu0 %2828 }
 0x385   : > { %v2824_v13 = vpop.permute.xlu1 %2823  ;;  %v1866_v34 = vsel %vm375_vm1, %v2820_v32, %v2815_v10  ;;  %v1867_v37 = vsel %vm375_vm1, %v2821_v8, %v2816_v28  ;;  %v2831_v35 = vunpack.i.h.bf16 %v2829_v7  ;;  %v2830_v40 = vunpack.i.l.bf16 %v2829_v7 }
 0x386   : > { %2557 = vmatpush1.bf16.msra.mxu1 %v2556_v57  ;;  %v2826_v41 = vunpack.i.h.bf16 %v2824_v13  ;;  %v2825_v42 = vunpack.i.l.bf16 %v2824_v13  ;;  %v1862_v46 = vsel %vm375_vm1, %v2815_v10, %v2820_v32  ;;  %v1863_v47 = vsel %vm375_vm1, %v2816_v28, %v2821_v8 }
 0x387   : > { %2559 = vmatprep.subr.bf16.mxu1 %v2558_v58  ;;  %v1871_v45 = vsel %vm2981_vm2, %v3300_v56, %v1866_v34  ;;  %v1873_v48 = vsel %vm2981_vm2, %v3304_v0, %v1867_v37  ;;  %v2572_v58 = vpack.c.bf16 %v3322_v20, %v3314_v12  ;;  %v1870_v0 = vsel %vm2985_vm3, %v3298_v53, %v1862_v46  ;;  %v301_v53 = vld [vmem:[%s3804_s3 + $0x10] sm:$0xf] }
 0x388   : > { %v2839_v36 = vpop.permute.xlu0 %2838  ;;  %v1868_v50 = vsel %vm375_vm1, %v2830_v40, %v2825_v42  ;;  %v1869_v49 = vsel %vm375_vm1, %v2831_v35, %v2826_v41  ;;  %v1864_v59 = vsel %vm375_vm1, %v2825_v42, %v2830_v40  ;;  %v1865_v60 = vsel %vm375_vm1, %v2826_v41, %v2831_v35  ;;  %v302_v40 = vld [vmem:[%s3804_s3 + $0x14] sm:$0xf] }
 0x389   : > { %2523 = vmatmul.mubr.msk.f32.vlgmr.msra.gmra.mrb[8].mxu1 %vm1585_vm11, %v299_v1  ;;  %v2834_v38 = vpop.permute.xlu1 %2833  ;;  %v2841_v51 = vunpack.i.h.bf16 %v2839_v36  ;;  %v2840_v52 = vunpack.i.l.bf16 %v2839_v36  ;;  %v2574_v61 = vpack.c.bf16 %v1873_v48, %v1871_v45  ;;  %v1872_v63 = vsel %vm2985_vm3, %v3302_v62, %v1863_v47 }
 0x38a   : > { %2561 = vmatpush1.bf16.msra.mxu1 %v2560_v17  ;;  %1945 = vmatprep.mubr.f32.mxu1 %v2885_v9  ;;  %v2836_v54 = vunpack.i.h.bf16 %v2834_v38  ;;  %v2835_v55 = vunpack.i.l.bf16 %v2834_v38  ;;  %v1875_v5 = vsel %vm2981_vm2, %v3318_v16, %v1868_v50  ;;  %v1877_v7 = vsel %vm2981_vm2, %v3324_v22, %v1869_v49 }
 0x38b   : > { %2563 = vmatprep.subr.bf16.mxu1 %v2562_v2  ;;  %v2576_v25 = vpack.c.bf16 %v1872_v63, %v1870_v0  ;;  %v2578_v8 = vpack.c.bf16 %v1877_v7, %v1875_v5  ;;  %v1874_v16 = vsel %vm2985_vm3, %v3314_v12, %v1864_v59  ;;  %v1876_v22 = vsel %vm2985_vm3, %v3322_v20, %v1865_v60 }
 0x38c   : > { %v2849_v57 = vpop.permute.xlu0 %2848  ;;  %v2122_v1 = vsel %vm362_vm8, %v2835_v55, %v2840_v52  ;;  %v2123_v4 = vsel %vm362_vm8, %v2836_v54, %v2841_v51  ;;  %v2126_v24 = vsel %vm362_vm8, %v2840_v52, %v2835_v55  ;;  %v2127_v32 = vsel %vm362_vm8, %v2841_v51, %v2836_v54 }
 0x38d   : > { %v2844_v56 = vpop.permute.xlu1 %2843  ;;  %v2851_v62 = vunpack.i.h.bf16 %v2849_v57  ;;  %v2850_v13 = vunpack.i.l.bf16 %v2849_v57  ;;  %v2131_v28 = vsel %vm3031_vm10, %v3430_v19, %v2122_v1  ;;  %v2133_v10 = vsel %vm3031_vm10, %v3425_v18, %v2123_v4  ;;  %v303_v57 = vld [vmem:[%s3804_s3 + $0x18] sm:$0xf] }
 0x38e   : > { %2565 = vmatpush1.bf16.msra.mxu1 %v2564_v31  ;;  %v2846_v17 = vunpack.i.h.bf16 %v2844_v56  ;;  %v2845_v2 = vunpack.i.l.bf16 %v2844_v56  ;;  %v2580_v31 = vpack.c.bf16 %v1876_v22, %v1874_v16  ;;  %v2130_v34 = vsel %vm3027_vm9, %v3438_v11, %v2126_v24 }
 0x38f   : > { %2567 = vmatprep.subr.bf16.mxu1 %v2566_v33  ;;  %v2582_v33 = vpack.c.bf16 %v2133_v10, %v2131_v28  ;;  %v2132_v37 = vsel %vm3027_vm9, %v3434_v21, %v2127_v32  ;;  %v2590_v50 = vpack.c.bf16 %v3425_v18, %v3430_v19  ;;  %v2592_v60 = vpack.c.bf16 %v3434_v21, %v3438_v11 }
 0x390   : > { %v2124_v12 = vsel %vm362_vm8, %v2845_v2, %v2850_v13  ;;  %v2125_v20 = vsel %vm362_vm8, %v2846_v17, %v2851_v62  ;;  %v2128_v36 = vsel %vm362_vm8, %v2850_v13, %v2845_v2  ;;  %v2129_v38 = vsel %vm362_vm8, %v2851_v62, %v2846_v17 }
 0x391   : > { %2524 = vmatmul.mubr.msk.f32.vlgmr.msra.gmra.mrb[8].mxu1 %vm1585_vm11, %v300_v39  ;;  %v2859_v39 = vpop.permute.xlu0 %2858  ;;  %v2854_v35 = vpop.permute.xlu1 %2853  ;;  %v2135_v41 = vsel %vm3031_vm10, %v3458_v27, %v2124_v12  ;;  %v2137_v42 = vsel %vm3031_vm10, %v3453_v26, %v2125_v20  ;;  %v2134_v46 = vsel %vm3027_vm9, %v3468_v23, %v2128_v36  ;;  %v2136_v47 = vsel %vm3027_vm9, %v3464_v6, %v2129_v38 }
 0x392   : > { %2569 = vmatpush1.bf16.msra.mxu1 %v2568_v43  ;;  %2021 = vmatprep.mubr.f32.mxu1 %v2885_v9  ;;  %v2584_v43 = vpack.c.bf16 %v2132_v37, %v2130_v34  ;;  %v2861_v45 = vunpack.i.h.bf16 %v2859_v39  ;;  %v2860_v48 = vunpack.i.l.bf16 %v2859_v39  ;;  %v2856_v51 = vunpack.i.h.bf16 %v2854_v35 }
 0x393   : > { %2571 = vmatprep.subr.bf16.mxu1 %v2570_v44  ;;  %v2586_v44 = vpack.c.bf16 %v2137_v42, %v2135_v41  ;;  %v2855_v52 = vunpack.i.l.bf16 %v2854_v35  ;;  %v2588_v55 = vpack.c.bf16 %v2136_v47, %v2134_v46  ;;  %v2594_v63 = vpack.c.bf16 %v3453_v26, %v3458_v27 }
 0x394   : > { %v2159_v29 = vsel %vm375_vm1, %v2861_v45, %v2856_v51  ;;  %v2155_v1 = vsel %vm375_vm1, %v2856_v51, %v2861_v45  ;;  %v2596_v62 = vpack.c.bf16 %v3464_v6, %v3468_v23 }
 0x395   : > { %v2869_v30 = vpop.permute.xlu0 %2868  ;;  %v2864_v54 = vpop.permute.xlu1 %2863  ;;  %v2158_v49 = vsel %vm375_vm1, %v2860_v48, %v2855_v52 }
 0x396   : > { %2573 = vmatpush1.bf16.msra.mxu1 %v2572_v58  ;;  %v2871_v56 = vunpack.i.h.bf16 %v2869_v30  ;;  %v2870_v58 = vunpack.i.l.bf16 %v2869_v30  ;;  %v2866_v0 = vunpack.i.h.bf16 %v2864_v54  ;;  %v2865_v59 = vunpack.i.l.bf16 %v2864_v54 }
 0x397   : > { %2575 = vmatprep.subr.bf16.mxu1 %v2574_v61  ;;  %v2154_v61 = vsel %vm375_vm1, %v2855_v52, %v2860_v48  ;;  %v2163_v4 = vsel %vm2981_vm2, %v3430_v19, %v2158_v49 }
 0x398   : > { %v2160_v5 = vsel %vm375_vm1, %v2870_v58, %v2865_v59  ;;  %v2161_v7 = vsel %vm375_vm1, %v2871_v56, %v2866_v0  ;;  %v2162_v19 = vsel %vm2985_vm3, %v3438_v11, %v2154_v61  ;;  %v2156_v17 = vsel %vm375_vm1, %v2865_v59, %v2870_v58 }
 0x399   : > { %2525 = vmatmul.mubr.msk.f32.vlgmr.msra.gmra.mrb[8].mxu1 %vm1585_vm11, %v301_v53  ;;  %v2165_v53 = vsel %vm2981_vm2, %v3425_v18, %v2159_v29  ;;  %v2164_v18 = vsel %vm2985_vm3, %v3434_v21, %v2155_v1  ;;  %v2157_v2 = vsel %vm375_vm1, %v2866_v0, %v2871_v56  ;;  %v2167_v24 = vsel %vm2981_vm2, %v3458_v27, %v2160_v5 }
 0x39a   : > { %2577 = vmatpush1.bf16.msra.mxu1 %v2576_v25  ;;  %2097 = vmatprep.mubr.f32.mxu1 %v2885_v9  ;;  %v2598_v13 = vpack.c.bf16 %v2165_v53, %v2163_v4  ;;  %v304_v25 = vld [vmem:[%s3804_s3 + $0x1c] sm:$0xf]  ;;  %v2169_v11 = vsel %vm2981_vm2, %v3453_v26, %v2161_v7  ;;  %v2600_v21 = vpack.c.bf16 %v2164_v18, %v2162_v19  ;;  %v305_v26 = vld [vmem:[%s3804_s3 + $0x20] sm:$0xf] }
 0x39b   : > { %2579 = vmatprep.subr.bf16.mxu1 %v2578_v8  ;;  %v2602_v3 = vpack.c.bf16 %v2169_v11, %v2167_v24  ;;  %v2166_v8 = vsel %vm2985_vm3, %v3468_v23, %v2156_v17  ;;  %v2168_v16 = vsel %vm2985_vm3, %v3464_v6, %v2157_v2 }
 0x39c   : > { %v2604_v14 = vpack.c.bf16 %v2168_v16, %v2166_v8 }
 0x39e   : > { %2581 = vmatpush1.bf16.msra.mxu1 %v2580_v31 }
 0x39f   : > { %2583 = vmatprep.subr.bf16.mxu1 %v2582_v33 }
 0x3a1   : > { %2526 = vmatmul.mubr.msk.f32.vlgmr.msra.gmra.mrb[8].mxu1 %vm1585_vm11, %v302_v40 }
 0x3a2   : > { %2585 = vmatpush1.bf16.msra.mxu1 %v2584_v43  ;;  %2237 = vmatprep.mubr.f32.mxu1 %v2885_v9 }
 0x3a3   : > { %2587 = vmatprep.subr.bf16.mxu1 %v2586_v44 }
 0x3a6   : > { %2589 = vmatpush1.bf16.msra.mxu1 %v2588_v55  ;;  %v1455_v27 = vpop.permute.xlu1 %1454 }
 0x3a7   : > { %2591 = vmatprep.subr.bf16.mxu1 %v2590_v50 }
 0x3a9   : > { %2527 = vmatmul.mubr.msk.f32.vlgmr.msra.gmra.mrb[8].mxu1 %vm1585_vm11, %v303_v57 }
 0x3aa   : > { %2593 = vmatpush1.bf16.msra.mxu1 %v2592_v60  ;;  %2313 = vmatprep.mubr.f32.mxu1 %v2885_v9 }
 0x3ab   : > { %2595 = vmatprep.subr.bf16.mxu1 %v2594_v63 }
 0x3ae   : > { %2597 = vmatpush1.bf16.msra.mxu1 %v2596_v62 }
 0x3af   : > { %2599 = vmatprep.subr.bf16.mxu1 %v2598_v13 }
 0x3b1   : > { %2528 = vmatmul.mubr.msk.f32.vlgmr.msra.gmra.mrb[8].mxu1 %vm1585_vm11, %v304_v25 }
 0x3b2   : > { %2601 = vmatpush1.bf16.msra.mxu1 %v2600_v21  ;;  %2389 = vmatprep.mubr.f32.mxu1 %v2885_v9 }
 0x3b3   : > { %2603 = vmatprep.subr.bf16.mxu1 %v2602_v3 }
 0x3b6   : > { %2605 = vmatpush1.bf16.msra.mxu1 %v2604_v14 }
 0x3b9   : > { %2529 = vmatmul.mubr.msk.f32.vlgmr.msra.gmra.mrb[8].mxu1 %vm1585_vm11, %v305_v26 }
 0x48c   : > { %v2391_v22 = vpop.f32.mrb[8].mxu1 }
 0x48d   : > { %v2622_v32 = vadd.f32 %v2391_v22, %v1455_v27  ;;  %v2393_v23 = vpop.f32.mrb[9].mxu1 }
 0x48e   : > { %v2623_v28 = vadd.f32 %v2393_v23, %v1455_v27 }
 0x490   : > { %v2400_v9 = vcombine.low %v2622_v32, %v2623_v28 }
 0x492   : > { %2402 = vst [vmem:[%s224_s24] sm:$0xff] %v2400_v9 }
 0x493 PF: > { %s15_s18 = sadd.s32 1, %s2879_s18  }
 0x494   : > { %p12_p4 = scmp.ge.s32.totalorder %s15_s18, 4  }
 0x496   :  { %14 = sbr.rel (!%p12_p4) target bundleno = 1 (0x1), region = 70 }

</bundles_post_ra>
